<compile_context>
chip_gen: v6e
topology: v6e:2x2x1
jax: 0.10.0
libtpu: 0.0.40
codegen_flags: <defaults>
</compile_context>

<pallas_src>
import math

import jax
import jax.numpy as jnp
from jax import lax
from jax.experimental import pallas as pl
from jax.experimental.pallas import tpu as pltpu


# ----------------------------- SDE config (VP SDE for x and adj) -------------
BETA_0 = 0.1
BETA_1 = 20.0
SDE_T = 1.0
EPS_T = 1e-3
NUM_STEPS = 4

# VPSDE.marginal_prob coefficients at t = T (perturb uses t = ones(B) * sde.T)
_LMC = -0.25 * SDE_T * SDE_T * (BETA_1 - BETA_0) - 0.5 * SDE_T * BETA_0
MEAN_T = math.exp(_LMC)
STD_T = math.sqrt(max(1.0 - math.exp(2.0 * _LMC), 1e-12))


def _step_table():
    """Per-step (0.5*beta*dt, beta*dt, sqrt(beta*dt)) on linspace(T, eps)."""
    # timesteps = linspace(T, eps, NUM_STEPS); dt = (T - eps) / NUM_STEPS
    # TODO(synk): verify against the reference sampler's exact timestep grid.
    dt = (SDE_T - EPS_T) / NUM_STEPS
    tbl = []
    for i in range(NUM_STEPS):
        t = SDE_T - i * (SDE_T - EPS_T) / max(NUM_STEPS - 1, 1)
        beta_t = BETA_0 + t * (BETA_1 - BETA_0)
        noise = math.sqrt(beta_t * dt) if i < NUM_STEPS - 1 else 0.0
        tbl.append((0.5 * beta_t * dt, beta_t * dt, noise))
    return tuple(tbl)


_STEPS = _step_table()


# ----------------------------- fused per-graph kernel ------------------------
def _reconstructor_kernel(x_ref, adj_ref, zx0_ref, za0_ref, zxs_ref, zas_ref,
                          w1_ref, b1_ref, w2_ref, b2_ref, wa_ref,
                          xo_ref, adjo_ref):
    _, N, F = x_ref.shape
    H = w1_ref.shape[1]
    inv_h = 1.0 / float(H)

    x = x_ref[0]                                          # (N, F) f32
    adj = adj_ref[0]                                      # (N, N) f32

    # ---- masks, computed ONCE and reused by every step ----
    # node_flags(adj): |adj| row-sum > 1e-5.  Column flags from column sums
    # (identical for the symmetric adjacencies GDSS works on).
    flags = (jnp.sum(jnp.abs(adj), axis=-1, keepdims=True) > 1e-5
             ).astype(jnp.float32)                        # (N, 1)
    flags_r = (jnp.sum(jnp.abs(adj), axis=0, keepdims=True) > 1e-5
               ).astype(jnp.float32)                      # (1, N)
    adj_mask = flags * flags_r                            # (N, N)

    # ---- perturb at t = T (VP-SDE marginal); noise pre-symmetrized in wrapper
    cur_x = (MEAN_T * x + STD_T * zx0_ref[0]) * flags
    cur_adj = (MEAN_T * adj + STD_T * za0_ref[0]) * adj_mask

    # hoisted bias broadcasts (JAX does not CSE broadcast_in_dim in the loop)
    b1b = jnp.broadcast_to(b1_ref[...], (N, H))
    b2b = jnp.broadcast_to(b2_ref[...], (N, F))

    # ---- reverse diffusion (predictor-only), statically unrolled step loop --
    for i in range(NUM_STEPS):
        half_bdt, bdt, ncoef = _STEPS[i]                  # Python constants

        cx_b = cur_x.astype(jnp.bfloat16)
        ca_b = cur_adj.astype(jnp.bfloat16)

        # node-feature score: GCN-style  tanh(A X W1 + b1) W2 + b2, masked.
        ax = jnp.dot(ca_b, cx_b, preferred_element_type=jnp.float32)   # (N,F)
        h = jnp.tanh(jnp.dot(ax.astype(jnp.bfloat16), w1_ref[...],
                             preferred_element_type=jnp.float32) + b1b)
        sx = (jnp.dot(h.astype(jnp.bfloat16), w2_ref[...],
                      preferred_element_type=jnp.float32) + b2b) * flags

        # adjacency score: symmetric bilinear form of node embeddings, masked.
        ha = jnp.tanh(jnp.dot(cx_b, wa_ref[...],
                              preferred_element_type=jnp.float32))     # (N,H)
        ha_b = ha.astype(jnp.bfloat16)
        sadj = lax.dot_general(ha_b, ha_b, (((1,), (1,)), ((), ())),
                               preferred_element_type=jnp.float32) * inv_h
        sadj = sadj * adj_mask                                          # (N,N)

        # Euler-Maruyama reverse step:
        #   x <- x + (0.5*beta*x + beta*score)*dt + sqrt(beta*dt)*z, masked.
        nx = cur_x + half_bdt * cur_x + bdt * sx
        na = cur_adj + half_bdt * cur_adj + bdt * sadj
        if i < NUM_STEPS - 1:        # last-step noise skipped statically
            nx = nx + ncoef * zxs_ref[i, 0]
            na = na + ncoef * zas_ref[i, 0]
        cur_x = nx * flags
        cur_adj = na * adj_mask

    xo_ref[0] = cur_x
    # quantize folded into the final store (same thresholding as GDSS quantize)
    adjo_ref[0] = jnp.where(cur_adj < 0.5, 0.0, 1.0).astype(jnp.float32)


# ----------------------------- wrapper: Reconstructor.forward ----------------
def init_params(key, F, H):
    k1, k2, k3 = jax.random.split(key, 3)
    return dict(
        # weights stored in bf16 (native MXU dtype, half the VMEM footprint)
        w1=(jax.random.normal(k1, (F, H), jnp.float32) * 0.1).astype(jnp.bfloat16),
        b1=jnp.zeros((1, H), jnp.float32),
        w2=(jax.random.normal(k2, (H, F), jnp.float32) * 0.1).astype(jnp.bfloat16),
        b2=jnp.zeros((1, F), jnp.float32),
        wa=(jax.random.normal(k3, (F, H), jnp.float32) * 0.1).astype(jnp.bfloat16),
    )


def reconstruct(x, adj, params, key):
    """Mirrors Reconstructor.forward: perturb -> sampling_fn -> quantize,
    fused into one pallas_call with a parallel grid over the batch."""
    B, N, F = x.shape
    assert adj.shape == (B, N, N)
    H = params["w1"].shape[1]
    S = max(NUM_STEPS - 1, 1)        # noise only needed for the first S steps

    # ---- Gaussian noise generated once in the wrapper (proper N(0,1) tails).
    kx0, ka0, kxs, kas = jax.random.split(key, 4)
    zx0 = jax.random.normal(kx0, (B, N, F), jnp.float32)
    zxs = jax.random.normal(kxs, (S, B, N, F), jnp.float32)

    # gen_noise_adj(sym=True): strict upper-tri noise, symmetrized; the
    # node-flag mask is applied inside the kernel.
    triu = jnp.triu(jnp.ones((N, N), jnp.float32), k=1)

    def _sym(z):
        zu = z * triu
        return zu + jnp.swapaxes(zu, -1, -2)

    za0 = _sym(jax.random.normal(ka0, (B, N, N), jnp.float32))
    zas = _sym(jax.random.normal(kas, (S, B, N, N), jnp.float32))

    compiler_params = None
    if jax.default_backend() == "tpu":
        compiler_params = pltpu.CompilerParams(
            dimension_semantics=("parallel",),      # both v7x TCs get graphs
            vmem_limit_bytes=64 * 1024 * 1024,      # safe on v5e/v6e/v7x
        )

    return pl.pallas_call(
        _reconstructor_kernel,
        out_shape=(jax.ShapeDtypeStruct((B, N, F), jnp.float32),
                   jax.ShapeDtypeStruct((B, N, N), jnp.float32)),
        grid=(B,),
        in_specs=[
            pl.BlockSpec((1, N, F), lambda b: (b, 0, 0)),        # x
            pl.BlockSpec((1, N, N), lambda b: (b, 0, 0)),        # adj
            pl.BlockSpec((1, N, F), lambda b: (b, 0, 0)),        # perturb x noise
            pl.BlockSpec((1, N, N), lambda b: (b, 0, 0)),        # perturb adj noise
            pl.BlockSpec((S, 1, N, F), lambda b: (0, b, 0, 0)),  # step x noise
            pl.BlockSpec((S, 1, N, N), lambda b: (0, b, 0, 0)),  # step adj noise
            pl.BlockSpec((F, H), lambda b: (0, 0)),              # w1 (bf16)
            pl.BlockSpec((1, H), lambda b: (0, 0)),              # b1
            pl.BlockSpec((H, F), lambda b: (0, 0)),              # w2 (bf16)
            pl.BlockSpec((1, F), lambda b: (0, 0)),              # b2
            pl.BlockSpec((F, H), lambda b: (0, 0)),              # wa (bf16)
        ],
        out_specs=(pl.BlockSpec((1, N, F), lambda b: (b, 0, 0)),
                   pl.BlockSpec((1, N, N), lambda b: (b, 0, 0))),
        compiler_params=compiler_params,
    )(x, adj, zx0, za0, zxs, zas,
      params["w1"], params["b1"], params["w2"], params["b2"], params["wa"])


if __name__ == "__main__":
    # Small but lane-dense sizes: B=2 graphs of N=16 nodes, F=H=128 features.
    # TODO(synk): at small N the adjacency tiles use 16/128 lanes; a lane-dense
    #             (B, N*N) adjacency layout only matters until N >= 128.
    B, N, F, H = 2, 16, 128, 128
    key = jax.random.PRNGKey(0)
    kx, kadj, kw, knoise = jax.random.split(key, 4)

    # node features
    x0 = jax.random.normal(kx, (B, N, F), jnp.float32)

    # symmetric 0/1 adjacency with no self loops; zero out one node of batch 0
    # to exercise the node_flags masking path
    a = jax.random.uniform(kadj, (B, N, N), jnp.float32)
    a = 0.5 * (a + jnp.transpose(a, (0, 2, 1)))
    adj0 = (a > 0.55).astype(jnp.float32) * (1.0 - jnp.eye(N, dtype=jnp.float32)[None])
    adj0 = adj0.at[0, N - 1, :].set(0.0).at[0, :, N - 1].set(0.0)

    params = init_params(kw, F, H)

    out_x, out_adj = reconstruct(x0, adj0, params, knoise)
    jax.block_until_ready((out_x, out_adj))
    assert out_x.shape == (B, N, F) and out_adj.shape == (B, N, N)
    assert out_x.dtype == jnp.float32 and out_adj.dtype == jnp.float32
    print("KERNEL_OK")
</pallas_src>

<mosaic_0001>
module attributes {stable_mosaic.version = 11 : i64} {
  func.func @_reconstructor_kernel(%arg0: i32, %arg1: memref<1x16x128xf32, #tpu.memory_space<vmem>>, %arg2: memref<1x16x16xf32, #tpu.memory_space<vmem>>, %arg3: memref<1x16x128xf32, #tpu.memory_space<vmem>>, %arg4: memref<1x16x16xf32, #tpu.memory_space<vmem>>, %arg5: memref<3x1x16x128xf32, #tpu.memory_space<vmem>>, %arg6: memref<3x1x16x16xf32, #tpu.memory_space<vmem>>, %arg7: memref<128x128xbf16, #tpu.memory_space<vmem>>, %arg8: memref<1x128xf32, #tpu.memory_space<vmem>>, %arg9: memref<128x128xbf16, #tpu.memory_space<vmem>>, %arg10: memref<1x128xf32, #tpu.memory_space<vmem>>, %arg11: memref<128x128xbf16, #tpu.memory_space<vmem>>, %arg12: memref<1x16x128xf32, #tpu.memory_space<vmem>>, %arg13: memref<1x16x16xf32, #tpu.memory_space<vmem>>) attributes {dimension_semantics = [#tpu.dimension_semantics<arbitrary>], iteration_bounds = array<i64: 2>, scalar_prefetch = 0 : i64, scratch_operands = 0 : i64, tpu.core_type = #tpu.core_type<tc>, window_params = [{transform_indices = @transform_0, window_bounds = array<i64: 1, 16, 128>}, {transform_indices = @transform_1, window_bounds = array<i64: 1, 16, 16>}, {transform_indices = @transform_2, window_bounds = array<i64: 1, 16, 128>}, {transform_indices = @transform_3, window_bounds = array<i64: 1, 16, 16>}, {transform_indices = @transform_4, window_bounds = array<i64: 3, 1, 16, 128>}, {transform_indices = @transform_5, window_bounds = array<i64: 3, 1, 16, 16>}, {pipeline_mode = #tpu.pipeline_mode<synchronous>, transform_indices = @transform_6, window_bounds = array<i64: 128, 128>}, {pipeline_mode = #tpu.pipeline_mode<synchronous>, transform_indices = @transform_7, window_bounds = array<i64: 1, 128>}, {pipeline_mode = #tpu.pipeline_mode<synchronous>, transform_indices = @transform_8, window_bounds = array<i64: 128, 128>}, {pipeline_mode = #tpu.pipeline_mode<synchronous>, transform_indices = @transform_9, window_bounds = array<i64: 1, 128>}, {pipeline_mode = #tpu.pipeline_mode<synchronous>, transform_indices = @transform_10, window_bounds = array<i64: 128, 128>}, {transform_indices = @transform_11, window_bounds = array<i64: 1, 16, 128>}, {transform_indices = @transform_12, window_bounds = array<i64: 1, 16, 16>}]} {
    %c0 = arith.constant 0 : index
    %c0_0 = arith.constant 0 : index
    %c0_1 = arith.constant 0 : index
    %0 = vector.load %arg1[%c0, %c0_0, %c0_1] : memref<1x16x128xf32, #tpu.memory_space<vmem>>, vector<1x16x128xf32>
    %1 = vector.shape_cast %0 : vector<1x16x128xf32> to vector<16x128xf32>
    %c0_2 = arith.constant 0 : index
    %c0_3 = arith.constant 0 : index
    %c0_4 = arith.constant 0 : index
    %2 = vector.load %arg2[%c0_2, %c0_3, %c0_4] : memref<1x16x16xf32, #tpu.memory_space<vmem>>, vector<1x16x16xf32>
    %3 = vector.shape_cast %2 : vector<1x16x16xf32> to vector<16x16xf32>
    %4 = math.absf %3 : vector<16x16xf32>
    %cst = arith.constant dense<0.000000e+00> : vector<16xf32>
    %5 = vector.multi_reduction <add>, %4, %cst [1] : vector<16x16xf32> to vector<16xf32>
    %6 = vector.shape_cast %5 : vector<16xf32> to vector<16x1xf32>
    %cst_5 = arith.constant 9.99999974E-6 : f32
    %7 = vector.broadcast %cst_5 : f32 to vector<16x1xf32>
    %8 = arith.cmpf ogt, %6, %7 : vector<16x1xf32>
    %9 = arith.extui %8 : vector<16x1xi1> to vector<16x1xi32>
    %10 = arith.sitofp %9 : vector<16x1xi32> to vector<16x1xf32>
    %11 = math.absf %3 : vector<16x16xf32>
    %cst_6 = arith.constant dense<0.000000e+00> : vector<16xf32>
    %12 = vector.multi_reduction <add>, %11, %cst_6 [0] : vector<16x16xf32> to vector<16xf32>
    %13 = vector.shape_cast %12 : vector<16xf32> to vector<1x16xf32>
    %cst_7 = arith.constant 9.99999974E-6 : f32
    %14 = vector.broadcast %cst_7 : f32 to vector<1x16xf32>
    %15 = arith.cmpf ogt, %13, %14 : vector<1x16xf32>
    %16 = arith.extui %15 : vector<1x16xi1> to vector<1x16xi32>
    %17 = arith.sitofp %16 : vector<1x16xi32> to vector<1x16xf32>
    %18 = vector.broadcast %10 : vector<16x1xf32> to vector<16x16xf32>
    %19 = vector.broadcast %17 : vector<1x16xf32> to vector<16x16xf32>
    %20 = arith.mulf %18, %19 : vector<16x16xf32>
    %cst_8 = arith.constant 0.00657158671 : f32
    %21 = vector.broadcast %cst_8 : f32 to vector<16x128xf32>
    %22 = arith.mulf %21, %1 : vector<16x128xf32>
    %c0_9 = arith.constant 0 : index
    %c0_10 = arith.constant 0 : index
    %c0_11 = arith.constant 0 : index
    %23 = vector.load %arg3[%c0_9, %c0_10, %c0_11] : memref<1x16x128xf32, #tpu.memory_space<vmem>>, vector<1x16x128xf32>
    %24 = vector.shape_cast %23 : vector<1x16x128xf32> to vector<16x128xf32>
    %cst_12 = arith.constant 0.999978423 : f32
    %25 = vector.broadcast %cst_12 : f32 to vector<16x128xf32>
    %26 = arith.mulf %25, %24 : vector<16x128xf32>
    %27 = arith.addf %22, %26 : vector<16x128xf32>
    %28 = vector.broadcast %10 : vector<16x1xf32> to vector<16x128xf32>
    %29 = arith.mulf %27, %28 : vector<16x128xf32>
    %cst_13 = arith.constant 0.00657158671 : f32
    %30 = vector.broadcast %cst_13 : f32 to vector<16x16xf32>
    %31 = arith.mulf %30, %3 : vector<16x16xf32>
    %c0_14 = arith.constant 0 : index
    %c0_15 = arith.constant 0 : index
    %c0_16 = arith.constant 0 : index
    %32 = vector.load %arg4[%c0_14, %c0_15, %c0_16] : memref<1x16x16xf32, #tpu.memory_space<vmem>>, vector<1x16x16xf32>
    %33 = vector.shape_cast %32 : vector<1x16x16xf32> to vector<16x16xf32>
    %cst_17 = arith.constant 0.999978423 : f32
    %34 = vector.broadcast %cst_17 : f32 to vector<16x16xf32>
    %35 = arith.mulf %34, %33 : vector<16x16xf32>
    %36 = arith.addf %31, %35 : vector<16x16xf32>
    %37 = arith.mulf %36, %20 : vector<16x16xf32>
    %c0_18 = arith.constant 0 : index
    %c0_19 = arith.constant 0 : index
    %38 = vector.load %arg8[%c0_18, %c0_19] : memref<1x128xf32, #tpu.memory_space<vmem>>, vector<1x128xf32>
    %39 = vector.shape_cast %38 : vector<1x128xf32> to vector<1x128xf32>
    %40 = vector.broadcast %39 : vector<1x128xf32> to vector<16x128xf32>
    %c0_20 = arith.constant 0 : index
    %c0_21 = arith.constant 0 : index
    %41 = vector.load %arg10[%c0_20, %c0_21] : memref<1x128xf32, #tpu.memory_space<vmem>>, vector<1x128xf32>
    %42 = vector.shape_cast %41 : vector<1x128xf32> to vector<1x128xf32>
    %43 = vector.broadcast %42 : vector<1x128xf32> to vector<16x128xf32>
    %44 = arith.truncf %29 : vector<16x128xf32> to vector<16x128xbf16>
    %45 = arith.truncf %37 : vector<16x16xf32> to vector<16x16xbf16>
    %cst_22 = arith.constant dense<0.000000e+00> : vector<16x128xf32>
    %46 = tpu.matmul %45, %44, %cst_22 {dimension_numbers = #tpu.dot_dimension_numbers<[1], [0], [0], [1], [0, 0, 1, 1], [], []>} : vector<16x16xbf16>, vector<16x128xbf16>, vector<16x128xf32> -> vector<16x128xf32>
    %47 = arith.truncf %46 : vector<16x128xf32> to vector<16x128xbf16>
    %c0_23 = arith.constant 0 : index
    %c0_24 = arith.constant 0 : index
    %48 = vector.load %arg7[%c0_23, %c0_24] : memref<128x128xbf16, #tpu.memory_space<vmem>>, vector<128x128xbf16>
    %cst_25 = arith.constant dense<0.000000e+00> : vector<16x128xf32>
    %49 = tpu.matmul %47, %48, %cst_25 {dimension_numbers = #tpu.dot_dimension_numbers<[1], [0], [0], [1], [0, 0, 1, 1], [], []>} : vector<16x128xbf16>, vector<128x128xbf16>, vector<16x128xf32> -> vector<16x128xf32>
    %50 = arith.addf %49, %40 : vector<16x128xf32>
    %51 = math.tanh %50 : vector<16x128xf32>
    %52 = arith.truncf %51 : vector<16x128xf32> to vector<16x128xbf16>
    %c0_26 = arith.constant 0 : index
    %c0_27 = arith.constant 0 : index
    %53 = vector.load %arg9[%c0_26, %c0_27] : memref<128x128xbf16, #tpu.memory_space<vmem>>, vector<128x128xbf16>
    %cst_28 = arith.constant dense<0.000000e+00> : vector<16x128xf32>
    %54 = tpu.matmul %52, %53, %cst_28 {dimension_numbers = #tpu.dot_dimension_numbers<[1], [0], [0], [1], [0, 0, 1, 1], [], []>} : vector<16x128xbf16>, vector<128x128xbf16>, vector<16x128xf32> -> vector<16x128xf32>
    %55 = arith.addf %54, %43 : vector<16x128xf32>
    %56 = vector.broadcast %10 : vector<16x1xf32> to vector<16x128xf32>
    %57 = arith.mulf %55, %56 : vector<16x128xf32>
    %c0_29 = arith.constant 0 : index
    %c0_30 = arith.constant 0 : index
    %58 = vector.load %arg11[%c0_29, %c0_30] : memref<128x128xbf16, #tpu.memory_space<vmem>>, vector<128x128xbf16>
    %cst_31 = arith.constant dense<0.000000e+00> : vector<16x128xf32>
    %59 = tpu.matmul %44, %58, %cst_31 {dimension_numbers = #tpu.dot_dimension_numbers<[1], [0], [0], [1], [0, 0, 1, 1], [], []>} : vector<16x128xbf16>, vector<128x128xbf16>, vector<16x128xf32> -> vector<16x128xf32>
    %60 = math.tanh %59 : vector<16x128xf32>
    %61 = arith.truncf %60 : vector<16x128xf32> to vector<16x128xbf16>
    %cst_32 = arith.constant dense<0.000000e+00> : vector<16x16xf32>
    %62 = tpu.matmul %61, %61, %cst_32 {dimension_numbers = #tpu.dot_dimension_numbers<[1], [1], [0], [0], [0, 0, 1, 0], [], []>} : vector<16x128xbf16>, vector<16x128xbf16>, vector<16x16xf32> -> vector<16x16xf32>
    %cst_33 = arith.constant 7.812500e-03 : f32
    %63 = vector.broadcast %cst_33 : f32 to vector<16x16xf32>
    %64 = arith.mulf %62, %63 : vector<16x16xf32>
    %65 = arith.mulf %64, %20 : vector<16x16xf32>
    %cst_34 = arith.constant 2.497500e+00 : f32
    %66 = vector.broadcast %cst_34 : f32 to vector<16x128xf32>
    %67 = arith.mulf %66, %29 : vector<16x128xf32>
    %68 = arith.addf %29, %67 : vector<16x128xf32>
    %cst_35 = arith.constant 4.995000e+00 : f32
    %69 = vector.broadcast %cst_35 : f32 to vector<16x128xf32>
    %70 = arith.mulf %69, %57 : vector<16x128xf32>
    %71 = arith.addf %68, %70 : vector<16x128xf32>
    %cst_36 = arith.constant 2.497500e+00 : f32
    %72 = vector.broadcast %cst_36 : f32 to vector<16x16xf32>
    %73 = arith.mulf %72, %37 : vector<16x16xf32>
    %74 = arith.addf %37, %73 : vector<16x16xf32>
    %cst_37 = arith.constant 4.995000e+00 : f32
    %75 = vector.broadcast %cst_37 : f32 to vector<16x16xf32>
    %76 = arith.mulf %75, %65 : vector<16x16xf32>
    %77 = arith.addf %74, %76 : vector<16x16xf32>
    %c0_38 = arith.constant 0 : index
    %c0_39 = arith.constant 0 : index
    %c0_40 = arith.constant 0 : index
    %c0_41 = arith.constant 0 : index
    %78 = vector.load %arg5[%c0_38, %c0_39, %c0_40, %c0_41] : memref<3x1x16x128xf32, #tpu.memory_space<vmem>>, vector<1x1x16x128xf32>
    %79 = vector.shape_cast %78 : vector<1x1x16x128xf32> to vector<16x128xf32>
    %cst_42 = arith.constant 2.23494959 : f32
    %80 = vector.broadcast %cst_42 : f32 to vector<16x128xf32>
    %81 = arith.mulf %80, %79 : vector<16x128xf32>
    %82 = arith.addf %71, %81 : vector<16x128xf32>
    %c0_43 = arith.constant 0 : index
    %c0_44 = arith.constant 0 : index
    %c0_45 = arith.constant 0 : index
    %c0_46 = arith.constant 0 : index
    %83 = vector.load %arg6[%c0_43, %c0_44, %c0_45, %c0_46] : memref<3x1x16x16xf32, #tpu.memory_space<vmem>>, vector<1x1x16x16xf32>
    %84 = vector.shape_cast %83 : vector<1x1x16x16xf32> to vector<16x16xf32>
    %cst_47 = arith.constant 2.23494959 : f32
    %85 = vector.broadcast %cst_47 : f32 to vector<16x16xf32>
    %86 = arith.mulf %85, %84 : vector<16x16xf32>
    %87 = arith.addf %77, %86 : vector<16x16xf32>
    %88 = vector.broadcast %10 : vector<16x1xf32> to vector<16x128xf32>
    %89 = arith.mulf %82, %88 : vector<16x128xf32>
    %90 = arith.mulf %87, %20 : vector<16x16xf32>
    %91 = arith.truncf %89 : vector<16x128xf32> to vector<16x128xbf16>
    %92 = arith.truncf %90 : vector<16x16xf32> to vector<16x16xbf16>
    %cst_48 = arith.constant dense<0.000000e+00> : vector<16x128xf32>
    %93 = tpu.matmul %92, %91, %cst_48 {dimension_numbers = #tpu.dot_dimension_numbers<[1], [0], [0], [1], [0, 0, 1, 1], [], []>} : vector<16x16xbf16>, vector<16x128xbf16>, vector<16x128xf32> -> vector<16x128xf32>
    %94 = arith.truncf %93 : vector<16x128xf32> to vector<16x128xbf16>
    %c0_49 = arith.constant 0 : index
    %c0_50 = arith.constant 0 : index
    %95 = vector.load %arg7[%c0_49, %c0_50] : memref<128x128xbf16, #tpu.memory_space<vmem>>, vector<128x128xbf16>
    %cst_51 = arith.constant dense<0.000000e+00> : vector<16x128xf32>
    %96 = tpu.matmul %94, %95, %cst_51 {dimension_numbers = #tpu.dot_dimension_numbers<[1], [0], [0], [1], [0, 0, 1, 1], [], []>} : vector<16x128xbf16>, vector<128x128xbf16>, vector<16x128xf32> -> vector<16x128xf32>
    %97 = arith.addf %96, %40 : vector<16x128xf32>
    %98 = math.tanh %97 : vector<16x128xf32>
    %99 = arith.truncf %98 : vector<16x128xf32> to vector<16x128xbf16>
    %c0_52 = arith.constant 0 : index
    %c0_53 = arith.constant 0 : index
    %100 = vector.load %arg9[%c0_52, %c0_53] : memref<128x128xbf16, #tpu.memory_space<vmem>>, vector<128x128xbf16>
    %cst_54 = arith.constant dense<0.000000e+00> : vector<16x128xf32>
    %101 = tpu.matmul %99, %100, %cst_54 {dimension_numbers = #tpu.dot_dimension_numbers<[1], [0], [0], [1], [0, 0, 1, 1], [], []>} : vector<16x128xbf16>, vector<128x128xbf16>, vector<16x128xf32> -> vector<16x128xf32>
    %102 = arith.addf %101, %43 : vector<16x128xf32>
    %103 = vector.broadcast %10 : vector<16x1xf32> to vector<16x128xf32>
    %104 = arith.mulf %102, %103 : vector<16x128xf32>
    %c0_55 = arith.constant 0 : index
    %c0_56 = arith.constant 0 : index
    %105 = vector.load %arg11[%c0_55, %c0_56] : memref<128x128xbf16, #tpu.memory_space<vmem>>, vector<128x128xbf16>
    %cst_57 = arith.constant dense<0.000000e+00> : vector<16x128xf32>
    %106 = tpu.matmul %91, %105, %cst_57 {dimension_numbers = #tpu.dot_dimension_numbers<[1], [0], [0], [1], [0, 0, 1, 1], [], []>} : vector<16x128xbf16>, vector<128x128xbf16>, vector<16x128xf32> -> vector<16x128xf32>
    %107 = math.tanh %106 : vector<16x128xf32>
    %108 = arith.truncf %107 : vector<16x128xf32> to vector<16x128xbf16>
    %cst_58 = arith.constant dense<0.000000e+00> : vector<16x16xf32>
    %109 = tpu.matmul %108, %108, %cst_58 {dimension_numbers = #tpu.dot_dimension_numbers<[1], [1], [0], [0], [0, 0, 1, 0], [], []>} : vector<16x128xbf16>, vector<16x128xbf16>, vector<16x16xf32> -> vector<16x16xf32>
    %cst_59 = arith.constant 7.812500e-03 : f32
    %110 = vector.broadcast %cst_59 : f32 to vector<16x16xf32>
    %111 = arith.mulf %109, %110 : vector<16x16xf32>
    %112 = arith.mulf %111, %20 : vector<16x16xf32>
    %cst_60 = arith.constant 1.66999078 : f32
    %113 = vector.broadcast %cst_60 : f32 to vector<16x128xf32>
    %114 = arith.mulf %113, %89 : vector<16x128xf32>
    %115 = arith.addf %89, %114 : vector<16x128xf32>
    %cst_61 = arith.constant 3.33998156 : f32
    %116 = vector.broadcast %cst_61 : f32 to vector<16x128xf32>
    %117 = arith.mulf %116, %104 : vector<16x128xf32>
    %118 = arith.addf %115, %117 : vector<16x128xf32>
    %cst_62 = arith.constant 1.66999078 : f32
    %119 = vector.broadcast %cst_62 : f32 to vector<16x16xf32>
    %120 = arith.mulf %119, %90 : vector<16x16xf32>
    %121 = arith.addf %90, %120 : vector<16x16xf32>
    %cst_63 = arith.constant 3.33998156 : f32
    %122 = vector.broadcast %cst_63 : f32 to vector<16x16xf32>
    %123 = arith.mulf %122, %112 : vector<16x16xf32>
    %124 = arith.addf %121, %123 : vector<16x16xf32>
    %c1 = arith.constant 1 : index
    %c0_64 = arith.constant 0 : index
    %c0_65 = arith.constant 0 : index
    %c0_66 = arith.constant 0 : index
    %125 = vector.load %arg5[%c1, %c0_64, %c0_65, %c0_66] : memref<3x1x16x128xf32, #tpu.memory_space<vmem>>, vector<1x1x16x128xf32>
    %126 = vector.shape_cast %125 : vector<1x1x16x128xf32> to vector<16x128xf32>
    %cst_67 = arith.constant 1.82756162 : f32
    %127 = vector.broadcast %cst_67 : f32 to vector<16x128xf32>
    %128 = arith.mulf %127, %126 : vector<16x128xf32>
    %129 = arith.addf %118, %128 : vector<16x128xf32>
    %c1_68 = arith.constant 1 : index
    %c0_69 = arith.constant 0 : index
    %c0_70 = arith.constant 0 : index
    %c0_71 = arith.constant 0 : index
    %130 = vector.load %arg6[%c1_68, %c0_69, %c0_70, %c0_71] : memref<3x1x16x16xf32, #tpu.memory_space<vmem>>, vector<1x1x16x16xf32>
    %131 = vector.shape_cast %130 : vector<1x1x16x16xf32> to vector<16x16xf32>
    %cst_72 = arith.constant 1.82756162 : f32
    %132 = vector.broadcast %cst_72 : f32 to vector<16x16xf32>
    %133 = arith.mulf %132, %131 : vector<16x16xf32>
    %134 = arith.addf %124, %133 : vector<16x16xf32>
    %135 = vector.broadcast %10 : vector<16x1xf32> to vector<16x128xf32>
    %136 = arith.mulf %129, %135 : vector<16x128xf32>
    %137 = arith.mulf %134, %20 : vector<16x16xf32>
    %138 = arith.truncf %136 : vector<16x128xf32> to vector<16x128xbf16>
    %139 = arith.truncf %137 : vector<16x16xf32> to vector<16x16xbf16>
    %cst_73 = arith.constant dense<0.000000e+00> : vector<16x128xf32>
    %140 = tpu.matmul %139, %138, %cst_73 {dimension_numbers = #tpu.dot_dimension_numbers<[1], [0], [0], [1], [0, 0, 1, 1], [], []>} : vector<16x16xbf16>, vector<16x128xbf16>, vector<16x128xf32> -> vector<16x128xf32>
    %141 = arith.truncf %140 : vector<16x128xf32> to vector<16x128xbf16>
    %c0_74 = arith.constant 0 : index
    %c0_75 = arith.constant 0 : index
    %142 = vector.load %arg7[%c0_74, %c0_75] : memref<128x128xbf16, #tpu.memory_space<vmem>>, vector<128x128xbf16>
    %cst_76 = arith.constant dense<0.000000e+00> : vector<16x128xf32>
    %143 = tpu.matmul %141, %142, %cst_76 {dimension_numbers = #tpu.dot_dimension_numbers<[1], [0], [0], [1], [0, 0, 1, 1], [], []>} : vector<16x128xbf16>, vector<128x128xbf16>, vector<16x128xf32> -> vector<16x128xf32>
    %144 = arith.addf %143, %40 : vector<16x128xf32>
    %145 = math.tanh %144 : vector<16x128xf32>
    %146 = arith.truncf %145 : vector<16x128xf32> to vector<16x128xbf16>
    %c0_77 = arith.constant 0 : index
    %c0_78 = arith.constant 0 : index
    %147 = vector.load %arg9[%c0_77, %c0_78] : memref<128x128xbf16, #tpu.memory_space<vmem>>, vector<128x128xbf16>
    %cst_79 = arith.constant dense<0.000000e+00> : vector<16x128xf32>
    %148 = tpu.matmul %146, %147, %cst_79 {dimension_numbers = #tpu.dot_dimension_numbers<[1], [0], [0], [1], [0, 0, 1, 1], [], []>} : vector<16x128xbf16>, vector<128x128xbf16>, vector<16x128xf32> -> vector<16x128xf32>
    %149 = arith.addf %148, %43 : vector<16x128xf32>
    %150 = vector.broadcast %10 : vector<16x1xf32> to vector<16x128xf32>
    %151 = arith.mulf %149, %150 : vector<16x128xf32>
    %c0_80 = arith.constant 0 : index
    %c0_81 = arith.constant 0 : index
    %152 = vector.load %arg11[%c0_80, %c0_81] : memref<128x128xbf16, #tpu.memory_space<vmem>>, vector<128x128xbf16>
    %cst_82 = arith.constant dense<0.000000e+00> : vector<16x128xf32>
    %153 = tpu.matmul %138, %152, %cst_82 {dimension_numbers = #tpu.dot_dimension_numbers<[1], [0], [0], [1], [0, 0, 1, 1], [], []>} : vector<16x128xbf16>, vector<128x128xbf16>, vector<16x128xf32> -> vector<16x128xf32>
    %154 = math.tanh %153 : vector<16x128xf32>
    %155 = arith.truncf %154 : vector<16x128xf32> to vector<16x128xbf16>
    %cst_83 = arith.constant dense<0.000000e+00> : vector<16x16xf32>
    %156 = tpu.matmul %155, %155, %cst_83 {dimension_numbers = #tpu.dot_dimension_numbers<[1], [1], [0], [0], [0, 0, 1, 0], [], []>} : vector<16x128xbf16>, vector<16x128xbf16>, vector<16x16xf32> -> vector<16x16xf32>
    %cst_84 = arith.constant 7.812500e-03 : f32
    %157 = vector.broadcast %cst_84 : f32 to vector<16x16xf32>
    %158 = arith.mulf %156, %157 : vector<16x16xf32>
    %159 = arith.mulf %158, %20 : vector<16x16xf32>
    %cst_85 = arith.constant 0.842481672 : f32
    %160 = vector.broadcast %cst_85 : f32 to vector<16x128xf32>
    %161 = arith.mulf %160, %136 : vector<16x128xf32>
    %162 = arith.addf %136, %161 : vector<16x128xf32>
    %cst_86 = arith.constant 1.68496335 : f32
    %163 = vector.broadcast %cst_86 : f32 to vector<16x128xf32>
    %164 = arith.mulf %163, %151 : vector<16x128xf32>
    %165 = arith.addf %162, %164 : vector<16x128xf32>
    %cst_87 = arith.constant 0.842481672 : f32
    %166 = vector.broadcast %cst_87 : f32 to vector<16x16xf32>
    %167 = arith.mulf %166, %137 : vector<16x16xf32>
    %168 = arith.addf %137, %167 : vector<16x16xf32>
    %cst_88 = arith.constant 1.68496335 : f32
    %169 = vector.broadcast %cst_88 : f32 to vector<16x16xf32>
    %170 = arith.mulf %169, %159 : vector<16x16xf32>
    %171 = arith.addf %168, %170 : vector<16x16xf32>
    %c2 = arith.constant 2 : index
    %c0_89 = arith.constant 0 : index
    %c0_90 = arith.constant 0 : index
    %c0_91 = arith.constant 0 : index
    %172 = vector.load %arg5[%c2, %c0_89, %c0_90, %c0_91] : memref<3x1x16x128xf32, #tpu.memory_space<vmem>>, vector<1x1x16x128xf32>
    %173 = vector.shape_cast %172 : vector<1x1x16x128xf32> to vector<16x128xf32>
    %cst_92 = arith.constant 1.29806137 : f32
    %174 = vector.broadcast %cst_92 : f32 to vector<16x128xf32>
    %175 = arith.mulf %174, %173 : vector<16x128xf32>
    %176 = arith.addf %165, %175 : vector<16x128xf32>
    %c2_93 = arith.constant 2 : index
    %c0_94 = arith.constant 0 : index
    %c0_95 = arith.constant 0 : index
    %c0_96 = arith.constant 0 : index
    %177 = vector.load %arg6[%c2_93, %c0_94, %c0_95, %c0_96] : memref<3x1x16x16xf32, #tpu.memory_space<vmem>>, vector<1x1x16x16xf32>
    %178 = vector.shape_cast %177 : vector<1x1x16x16xf32> to vector<16x16xf32>
    %cst_97 = arith.constant 1.29806137 : f32
    %179 = vector.broadcast %cst_97 : f32 to vector<16x16xf32>
    %180 = arith.mulf %179, %178 : vector<16x16xf32>
    %181 = arith.addf %171, %180 : vector<16x16xf32>
    %182 = vector.broadcast %10 : vector<16x1xf32> to vector<16x128xf32>
    %183 = arith.mulf %176, %182 : vector<16x128xf32>
    %184 = arith.mulf %181, %20 : vector<16x16xf32>
    %185 = arith.truncf %183 : vector<16x128xf32> to vector<16x128xbf16>
    %186 = arith.truncf %184 : vector<16x16xf32> to vector<16x16xbf16>
    %cst_98 = arith.constant dense<0.000000e+00> : vector<16x128xf32>
    %187 = tpu.matmul %186, %185, %cst_98 {dimension_numbers = #tpu.dot_dimension_numbers<[1], [0], [0], [1], [0, 0, 1, 1], [], []>} : vector<16x16xbf16>, vector<16x128xbf16>, vector<16x128xf32> -> vector<16x128xf32>
    %188 = arith.truncf %187 : vector<16x128xf32> to vector<16x128xbf16>
    %c0_99 = arith.constant 0 : index
    %c0_100 = arith.constant 0 : index
    %189 = vector.load %arg7[%c0_99, %c0_100] : memref<128x128xbf16, #tpu.memory_space<vmem>>, vector<128x128xbf16>
    %cst_101 = arith.constant dense<0.000000e+00> : vector<16x128xf32>
    %190 = tpu.matmul %188, %189, %cst_101 {dimension_numbers = #tpu.dot_dimension_numbers<[1], [0], [0], [1], [0, 0, 1, 1], [], []>} : vector<16x128xbf16>, vector<128x128xbf16>, vector<16x128xf32> -> vector<16x128xf32>
    %191 = arith.addf %190, %40 : vector<16x128xf32>
    %192 = math.tanh %191 : vector<16x128xf32>
    %193 = arith.truncf %192 : vector<16x128xf32> to vector<16x128xbf16>
    %c0_102 = arith.constant 0 : index
    %c0_103 = arith.constant 0 : index
    %194 = vector.load %arg9[%c0_102, %c0_103] : memref<128x128xbf16, #tpu.memory_space<vmem>>, vector<128x128xbf16>
    %cst_104 = arith.constant dense<0.000000e+00> : vector<16x128xf32>
    %195 = tpu.matmul %193, %194, %cst_104 {dimension_numbers = #tpu.dot_dimension_numbers<[1], [0], [0], [1], [0, 0, 1, 1], [], []>} : vector<16x128xbf16>, vector<128x128xbf16>, vector<16x128xf32> -> vector<16x128xf32>
    %196 = arith.addf %195, %43 : vector<16x128xf32>
    %197 = vector.broadcast %10 : vector<16x1xf32> to vector<16x128xf32>
    %198 = arith.mulf %196, %197 : vector<16x128xf32>
    %c0_105 = arith.constant 0 : index
    %c0_106 = arith.constant 0 : index
    %199 = vector.load %arg11[%c0_105, %c0_106] : memref<128x128xbf16, #tpu.memory_space<vmem>>, vector<128x128xbf16>
    %cst_107 = arith.constant dense<0.000000e+00> : vector<16x128xf32>
    %200 = tpu.matmul %185, %199, %cst_107 {dimension_numbers = #tpu.dot_dimension_numbers<[1], [0], [0], [1], [0, 0, 1, 1], [], []>} : vector<16x128xbf16>, vector<128x128xbf16>, vector<16x128xf32> -> vector<16x128xf32>
    %201 = math.tanh %200 : vector<16x128xf32>
    %202 = arith.truncf %201 : vector<16x128xf32> to vector<16x128xbf16>
    %cst_108 = arith.constant dense<0.000000e+00> : vector<16x16xf32>
    %203 = tpu.matmul %202, %202, %cst_108 {dimension_numbers = #tpu.dot_dimension_numbers<[1], [1], [0], [0], [0, 0, 1, 0], [], []>} : vector<16x128xbf16>, vector<16x128xbf16>, vector<16x16xf32> -> vector<16x16xf32>
    %cst_109 = arith.constant 7.812500e-03 : f32
    %204 = vector.broadcast %cst_109 : f32 to vector<16x16xf32>
    %205 = arith.mulf %203, %204 : vector<16x16xf32>
    %206 = arith.mulf %205, %20 : vector<16x16xf32>
    %cst_110 = arith.constant 0.0149725126 : f32
    %207 = vector.broadcast %cst_110 : f32 to vector<16x128xf32>
    %208 = arith.mulf %207, %183 : vector<16x128xf32>
    %209 = arith.addf %183, %208 : vector<16x128xf32>
    %cst_111 = arith.constant 0.0299450252 : f32
    %210 = vector.broadcast %cst_111 : f32 to vector<16x128xf32>
    %211 = arith.mulf %210, %198 : vector<16x128xf32>
    %212 = arith.addf %209, %211 : vector<16x128xf32>
    %cst_112 = arith.constant 0.0149725126 : f32
    %213 = vector.broadcast %cst_112 : f32 to vector<16x16xf32>
    %214 = arith.mulf %213, %184 : vector<16x16xf32>
    %215 = arith.addf %184, %214 : vector<16x16xf32>
    %cst_113 = arith.constant 0.0299450252 : f32
    %216 = vector.broadcast %cst_113 : f32 to vector<16x16xf32>
    %217 = arith.mulf %216, %206 : vector<16x16xf32>
    %218 = arith.addf %215, %217 : vector<16x16xf32>
    %219 = vector.broadcast %10 : vector<16x1xf32> to vector<16x128xf32>
    %220 = arith.mulf %212, %219 : vector<16x128xf32>
    %221 = arith.mulf %218, %20 : vector<16x16xf32>
    %c0_114 = arith.constant 0 : index
    %c0_115 = arith.constant 0 : index
    %c0_116 = arith.constant 0 : index
    %222 = vector.load %arg12[%c0_114, %c0_115, %c0_116] : memref<1x16x128xf32, #tpu.memory_space<vmem>>, vector<1x16x128xf32>
    %223 = vector.shape_cast %222 : vector<1x16x128xf32> to vector<16x128xf32>
    %224 = vector.shape_cast %220 : vector<16x128xf32> to vector<1x16x128xf32>
    tpu.vector_store %arg12[%c0_114, %c0_115, %c0_116], %224 {strides = array<i32>} : memref<1x16x128xf32, #tpu.memory_space<vmem>>, vector<1x16x128xf32>,
    %cst_117 = arith.constant 5.000000e-01 : f32
    %225 = vector.broadcast %cst_117 : f32 to vector<16x16xf32>
    %226 = arith.cmpf olt, %221, %225 : vector<16x16xf32>
    %cst_118 = arith.constant 0.000000e+00 : f32
    %cst_119 = arith.constant 1.000000e+00 : f32
    %227 = vector.broadcast %cst_118 : f32 to vector<16x16xf32>
    %228 = vector.broadcast %cst_119 : f32 to vector<16x16xf32>
    %229 = arith.select %226, %227, %228 : vector<16x16xi1>, vector<16x16xf32>
    %c0_120 = arith.constant 0 : index
    %c0_121 = arith.constant 0 : index
    %c0_122 = arith.constant 0 : index
    %230 = vector.load %arg13[%c0_120, %c0_121, %c0_122] : memref<1x16x16xf32, #tpu.memory_space<vmem>>, vector<1x16x16xf32>
    %231 = vector.shape_cast %230 : vector<1x16x16xf32> to vector<16x16xf32>
    %232 = vector.shape_cast %229 : vector<16x16xf32> to vector<1x16x16xf32>
    tpu.vector_store %arg13[%c0_120, %c0_121, %c0_122], %232 {strides = array<i32>} : memref<1x16x16xf32, #tpu.memory_space<vmem>>, vector<1x16x16xf32>,
    return
  }
  func.func @transform_0(%arg0: i32) -> (i32, i32, i32) {
    %c0_i32 = arith.constant 0 : i32
    %c0_i32_0 = arith.constant 0 : i32
    %c0_i32_1 = arith.constant 0 : i32
    return %arg0, %c0_i32, %c0_i32_0 : i32, i32, i32
  }
  func.func @transform_1(%arg0: i32) -> (i32, i32, i32) {
    %c0_i32 = arith.constant 0 : i32
    %c0_i32_0 = arith.constant 0 : i32
    %c0_i32_1 = arith.constant 0 : i32
    return %arg0, %c0_i32, %c0_i32_0 : i32, i32, i32
  }
  func.func @transform_2(%arg0: i32) -> (i32, i32, i32) {
    %c0_i32 = arith.constant 0 : i32
    %c0_i32_0 = arith.constant 0 : i32
    %c0_i32_1 = arith.constant 0 : i32
    return %arg0, %c0_i32, %c0_i32_0 : i32, i32, i32
  }
  func.func @transform_3(%arg0: i32) -> (i32, i32, i32) {
    %c0_i32 = arith.constant 0 : i32
    %c0_i32_0 = arith.constant 0 : i32
    %c0_i32_1 = arith.constant 0 : i32
    return %arg0, %c0_i32, %c0_i32_0 : i32, i32, i32
  }
  func.func @transform_4(%arg0: i32) -> (i32, i32, i32, i32) {
    %c0_i32 = arith.constant 0 : i32
    %c0_i32_0 = arith.constant 0 : i32
    %c0_i32_1 = arith.constant 0 : i32
    %c0_i32_2 = arith.constant 0 : i32
    return %c0_i32, %arg0, %c0_i32_0, %c0_i32_1 : i32, i32, i32, i32
  }
  func.func @transform_5(%arg0: i32) -> (i32, i32, i32, i32) {
    %c0_i32 = arith.constant 0 : i32
    %c0_i32_0 = arith.constant 0 : i32
    %c0_i32_1 = arith.constant 0 : i32
    %c0_i32_2 = arith.constant 0 : i32
    return %c0_i32, %arg0, %c0_i32_0, %c0_i32_1 : i32, i32, i32, i32
  }
  func.func @transform_6(%arg0: i32) -> (i32, i32) {
    %c0_i32 = arith.constant 0 : i32
    %c0_i32_0 = arith.constant 0 : i32
    %c0_i32_1 = arith.constant 0 : i32
    return %c0_i32, %c0_i32_0 : i32, i32
  }
  func.func @transform_7(%arg0: i32) -> (i32, i32) {
    %c0_i32 = arith.constant 0 : i32
    %c0_i32_0 = arith.constant 0 : i32
    %c0_i32_1 = arith.constant 0 : i32
    return %c0_i32, %c0_i32_0 : i32, i32
  }
  func.func @transform_8(%arg0: i32) -> (i32, i32) {
    %c0_i32 = arith.constant 0 : i32
    %c0_i32_0 = arith.constant 0 : i32
    %c0_i32_1 = arith.constant 0 : i32
    return %c0_i32, %c0_i32_0 : i32, i32
  }
  func.func @transform_9(%arg0: i32) -> (i32, i32) {
    %c0_i32 = arith.constant 0 : i32
    %c0_i32_0 = arith.constant 0 : i32
    %c0_i32_1 = arith.constant 0 : i32
    return %c0_i32, %c0_i32_0 : i32, i32
  }
  func.func @transform_10(%arg0: i32) -> (i32, i32) {
    %c0_i32 = arith.constant 0 : i32
    %c0_i32_0 = arith.constant 0 : i32
    %c0_i32_1 = arith.constant 0 : i32
    return %c0_i32, %c0_i32_0 : i32, i32
  }
  func.func @transform_11(%arg0: i32) -> (i32, i32, i32) {
    %c0_i32 = arith.constant 0 : i32
    %c0_i32_0 = arith.constant 0 : i32
    %c0_i32_1 = arith.constant 0 : i32
    return %arg0, %c0_i32, %c0_i32_0 : i32, i32, i32
  }
  func.func @transform_12(%arg0: i32) -> (i32, i32, i32) {
    %c0_i32 = arith.constant 0 : i32
    %c0_i32_0 = arith.constant 0 : i32
    %c0_i32_1 = arith.constant 0 : i32
    return %arg0, %c0_i32, %c0_i32_0 : i32, i32, i32
  }
}

</mosaic_0001>

<bundles_post_ra>
// kernel: tpu_custom_call.1
= control target key start
LH: loop header
LB: loop body
LE: loop exit
PB: predicated region body
PF: predicated region fallthrough
CT: control target
= control target key end

     0   :  { %s4275_s0 = inlined_call_operand.hbm [shape: f32[2,16,128], index: 0, kind: input, shape index: {}]   ;;  %s4276_s1 = inlined_call_operand.hbm [shape: f32[2,16,16], index: 1, kind: input, shape index: {}]   ;;  %s4277_s2 = inlined_call_operand.hbm [shape: f32[2,16,128], index: 2, kind: input, shape index: {}]   ;;  %s4278_s3 = inlined_call_operand.hbm [shape: f32[2,16,16], index: 3, kind: input, shape index: {}]   ;;  %s4279_s4 = inlined_call_operand.hbm [shape: f32[3,2,16,128], index: 4, kind: input, shape index: {}]   ;;  %s4280_s5 = inlined_call_operand.hbm [shape: f32[3,2,16,16], index: 5, kind: input, shape index: {}]   ;;  %s4281_s6 = inlined_call_operand.hbm [shape: bf16[128,128], index: 6, kind: input, shape index: {}]   ;;  %s4282_s7 = inlined_call_operand.vmem [shape: f32[1,128], index: 7, kind: input, shape index: {}]   ;;  %s4283_s8 = inlined_call_operand.hbm [shape: bf16[128,128], index: 8, kind: input, shape index: {}]   ;;  %s4284_s9 = inlined_call_operand.vmem [shape: f32[1,128], index: 9, kind: input, shape index: {}]   ;;  %s4285_s10 = inlined_call_operand.hbm [shape: bf16[128,128], index: 10, kind: input, shape index: {}]   ;;  %s4286_s11 = inlined_call_operand.hbm [shape: f32[2,16,128], index: 11, kind: output, shape index: {0}]   ;;  %s4287_s12 = inlined_call_operand.hbm [shape: f32[2,16,16], index: 12, kind: output, shape index: {1}]  }
   0x1   :  { %4302 = sst [smem:[#allocation41_spill]] %s4276_s1 }
   0x2   :  { %4303 = sst [smem:[#allocation42_spill]] %s4281_s6 }
   0x3   :  { %4304 = sst [smem:[#allocation43_spill]] %s4283_s8 }
   0x4   :  { %4305 = sst [smem:[#allocation44_spill]] %s4285_s10 }
   0x5   :  { %4306 = sst [smem:[#allocation45_spill]] %s4286_s11 }
   0x6   :  { %4307 = sst [smem:[#allocation46_spill]] %s4287_s12 }
   0x7   :  { %18 = vsyncpa [#allocation3], 0 }
   0x8   :  { %20 = vsyncpa [#allocation3 + $0x1], 0 }
   0x9   :  { %21 = vsyncpa [#allocation6], 0 }
   0xa   :  { %23 = vsyncpa [#allocation6 + $0x1], 0 }
   0xb   :  { %24 = vsyncpa [#allocation9], 0 }
   0xc   :  { %26 = vsyncpa [#allocation9 + $0x1], 0 }
   0xd   :  { %27 = vsyncpa [#allocation12], 0 }
   0xe   :  { %29 = vsyncpa [#allocation12 + $0x1], 0 }
   0xf   :  { %30 = vsyncpa [#allocation15], 0 }
  0x10   :  { %31 = vsyncpa [#allocation4], 0 }
  0x11   :  { %33 = vsyncpa [#allocation4 + $0x1], 0 }
  0x12   :  { %34 = vsyncpa [#allocation19], 0 }
  0x13   :  { %36 = vsyncpa [#allocation19 + $0x1], 0  ;;  %s3364_s21 = smov 0   ;;  %s3366_s22 = smov 0  }
  0x14   :  { %s3368_s23 = smov 0   ;;  %s3370_s24 = smov 0  }
  0x15 LB: > { %4308 = sst [smem:[#allocation34_spill]] %s3255_s21  ;;  %s3385_s25 = sadd.s32 4294967295, %s3267_s24   ;;  %s3267_s24 = sphi %s3370_s24, %s4341_s24   ;;  %s3263_s23 = sphi %s3368_s23, %s4343_s23   ;;  %s3259_s22 = sphi %s3366_s22, %s4345_s22   ;;  %s3255_s21 = sphi %s3364_s21, %s4344_s21  }
  0x16   : > { %4309 = sst [smem:[#allocation35_spill]] %s3263_s23  ;;  %s2285_s26 = sadd.s32 4294967294, %s3267_s24  }
  0x17   : > { %4310 = sst [smem:[#allocation36_spill]] %s3267_s24  ;;  %s3389_s27 = sadd.s32 1, %s3267_s24  }
  0x18   : > { %4311 = sst [smem:[#allocation37_spill]] %s3389_s27  ;;  %s49_s28 = sadd.s32 1, %s3263_s23 }
  0x19   : > { %s46_s29 = ssub.s32 %s3267_s24, %s3389_s27  ;;  %p56_p0 = scmp.ne.s32.totalorder %s3263_s23, %s3259_s22 }
  0x1a   : > { %p47_p1 = scmp.eq.s32.totalorder %s46_s29, 0  ;;  %p57_p2 = scmp.eq.s32.totalorder %s3267_s24, 0 }
  0x1b   : > { %p62_p3 = scmp.ne.s32.totalorder %s3259_s22, %s3255_s21  ;;  %p4288_p4 = scmp.eq.s32.totalorder %s3385_s25, 0 }
  0x1c   : > { %s3401_s30 = scalar_select %p47_p1, %s3263_s23, %s49_s28  }
  0x1d   : > { %p3403_p5 = por %p57_p2, %p56_p0  ;;  %p3409_p6 = por %p4288_p4, %p62_p3 }
  0x1e   : > { %4312 = sst [smem:[#allocation38_spill]] %s3401_s30  ;;  %p321_p7 = scmp.eq.s32.totalorder %s3385_s25, 1 }
  0x1f   : > { %s4314_s14 = scalar_select %p3409_p6, 1, 0 }
  0x20   : > { %p327_p8 = scmp.eq.s32.totalorder %s2285_s26, 1  ;;  %p2286_p9 = scmp.ge.s32.totalorder %s3267_s24, 1 }
  0x21   : > { %p360_p10 = scmp.lt.s32.totalorder %s3267_s24, 3  ;;  %p3416_p11 = por %p321_p7, %p56_p0 }
  0x22   : > { %p3420_p12 = por %p327_p8, %p62_p3  ;;  %s3269_s18 = smov [#allocation14]  }
  0x23   : > { %s4315_s15 = scalar_select %p3416_p11, 1, 0 }
  0x24   : > { %s4317_s16 = scalar_select %p3420_p12, 1, 0 }
  0x25   : > { %4316 = sst [smem:[#allocation39_spill]] %s4315_s15  ;;  %p3424_p13 = pnand %p2286_p9, %p360_p10 }
  0x26   : > { %4318 = sst [smem:[#allocation40_spill]] %s4317_s16  ;;  %s388_s19 = sshll.u32 %s3269_s18, 4  ;;  %s389_s19 = int_to_ptr.vmem [resolvable:$true] %s388_s19 }
  0x27   : > { %p2835_p1 = pneg %p3424_p13  ;;  %s3270_s26 = smov [#allocation13]  }
  0x28   : > { %s372_s28 = sshll.u32 %s3270_s26, 4  ;;  %s2982_s29 = scalar_lea.vmem %s389_s19, 1024  ;;  %s373_s28 = int_to_ptr.vmem [resolvable:$true] %s372_s28 }
  0x29   : > { %p3432_p2 = pnand %p2835_p1, %p4288_p4  ;;  %p2983_p3 = scmp.ne.s32.totalorder %s389_s19, %s2982_s29 }
  0x2a   : > { %p2990_p9 = scmp.lt.s32.totalorder %s389_s19, %s389_s19  ;;  %p2991_p10 = scmp.lt.s32.totalorder %s2982_s29, %s2982_s29 }
  0x2b   : > { %p2973_p0 = pneg %p3432_p2 }
  0x2c   : > { %p2992_p1 = por %p2991_p10, %p2990_p9 }
  0x2d   : > { %p2985_p7 = pnand %p2983_p3, %p2973_p0 }
  0x2f   : > { %p2986_p8 = pneg %p2985_p7 }
  0x31   : > { %p2993_p4 = pnand %p2992_p1, %p2986_p8 }
  0x33   : > { %2996 = shalt.err (!%p2993_p4)
}
  0x34   : > { %s3271_s18 = smov 64   ;;  %s3272_s30 = smov 4  }
  0x35   : > { %s4321_s8 = sld [smem:[#allocation43_spill]]  ;;  %s3008_s16 = scalar_lea.vmem %s373_s28, 1024 }
  0x36   : > { %p3009_p12 = scmp.ne.s32.totalorder %s373_s28, %s3008_s16  ;;  %p3016_p11 = scmp.lt.s32.totalorder %s373_s28, %s373_s28 }
  0x37   : > { %p3017_p6 = scmp.lt.s32.totalorder %s3008_s16, %s3008_s16 }
  0x38   : > { %p3011_p3 = pnand %p3009_p12, %p2973_p0 }
  0x39   : > { %p3018_p9 = por %p3017_p6, %p3016_p11 }
  0x3a   : > { %p3012_p7 = pneg %p3011_p3 }
  0x3b   : > { %2841 = dma.hbm_to_vmem [thread:$0]  (!%p3432_p2), %s4321_s8, 1024, %s389_s19, [#allocation15], %s3271_s18, %s3271_s18, %s3272_s30  }
  0x3c   : > { %p3019_p8 = pnand %p3018_p9, %p3012_p7 }
  0x3e   : > { %3022 = shalt.err (!%p3019_p8)
}
  0x3f   : > { %s4322_s6 = sld [smem:[#allocation42_spill]]  ;;  %s3273_s27 = smov [#allocation16]  }
  0x40   : > { %s404_s19 = sshll.u32 %s3273_s27, 4  ;;  %s405_s19 = int_to_ptr.vmem [resolvable:$true] %s404_s19 }
  0x41   : > { %s3034_s26 = scalar_lea.vmem %s405_s19, 1024  ;;  %p3042_p1 = scmp.lt.s32.totalorder %s405_s19, %s405_s19 }
  0x42   : > { %p3035_p4 = scmp.ne.s32.totalorder %s405_s19, %s3034_s26  ;;  %p3043_p6 = scmp.lt.s32.totalorder %s3034_s26, %s3034_s26 }
  0x44   : > { %p3037_p12 = pnand %p3035_p4, %p2973_p0  ;;  %p3044_p11 = por %p3043_p6, %p3042_p1 }
  0x45   : > { %2838 = dma.hbm_to_vmem [thread:$0]  (!%p3432_p2), %s4322_s6, 1024, %s373_s28, [#allocation12], %s3271_s18, %s3271_s18, %s3272_s30  }
  0x46   : > { %p3038_p10 = pneg %p3037_p12 }
  0x48   : > { %p3045_p3 = pnand %p3044_p11, %p3038_p10 }
  0x4a   : > { %3048 = shalt.err (!%p3045_p3)
}
  0x4b   : > { %s4323_s10 = sld [smem:[#allocation44_spill]]  ;;  %p4296_p7 = scmp.ge.s32.totalorder %s3267_s24, 2 }
  0x4c   : > { %s3466_s28 = sand.u32 (!%p4296_p7), 1, %s3263_s23   ;;  %s3469_s29 = sshll.u32 (!%p4296_p7), %s3267_s24, 8 }
  0x4d   : > { %414 = sbr.rel (%p4296_p7) target bundleno = 199 (0xc7), region = 36  ;;  %s3472_s20 = sshll.u32 (!%p4296_p7), %s3466_s28, 4 }
  0x4e   : > { %s3475_s27 = sand.u32 (!%p4296_p7), 1, %s3267_s24   ;;  %s4324_s1 = sld [smem:[#allocation41_spill]] (!%p4296_p7) }
  0x4f   : > { %s443_s26 = scalar_lea.vmem (!%p4296_p7), [#allocation5], %s3472_s20 }
  0x50   : > { %s450_s16 = sshll.u32 (!%p4296_p7), %s443_s26, 4  ;;  %s3484_s16 = int_to_ptr.vmem [resolvable:$true] %s450_s16 }
  0x51   : > { %2844 = dma.hbm_to_vmem [thread:$0]  (!%p3432_p2), %s4323_s10, 1024, %s405_s19, [#allocation15], %s3271_s18, %s3271_s18, %s3272_s30  }
  0x54   : > { %s3481_s19 = scalar_lea.hbm %s4324_s1, %s3469_s29  ;;  %s3053_s30 = scalar_lea.hbm %s4324_s1, 512 }
  0x55   : > { %s3049_s6 = scalar_lea.hbm %s3481_s19, 256  ;;  %p3054_p8 = scmp.lt.s32.totalorder %s3481_s19, %s4324_s1 }
  0x56   : > { %p3050_p2 = scmp.ne.s32.totalorder %s3481_s19, %s3049_s6  ;;  %p3055_p4 = scmp.lt.s32.totalorder %s3053_s30, %s3049_s6 }
  0x58   : > { %p3051_p0 = pnand %p3050_p2, %p3403_p5  ;;  %p3056_p12 = por %p3055_p4, %p3054_p8 }
  0x5a   : > { %p3052_p9 = pneg %p3051_p0 }
  0x5c   : > { %p3057_p10 = pnand %p3056_p12, %p3052_p9 }
  0x5e   : > { %3060 = shalt.err (!%p3057_p10)
}
  0x5f   : > { %s3061_s26 = scalar_lea.vmem %s3484_s16, 256  ;;  %s3274_s21 = smov [#allocation5]  }
  0x60   : > { %p3062_p1 = scmp.ne.s32.totalorder %s3484_s16, %s3061_s26  ;;  %s3065_s8 = sshll.u32 %s3274_s21, 4  ;;  %s3066_s8 = int_to_ptr.vmem [resolvable:$false] %s3065_s8 }
  0x61   : > { %s3067_s10 = scalar_lea.vmem %s3066_s8, 512  ;;  %p3068_p3 = scmp.lt.s32.totalorder %s3484_s16, %s3066_s8 }
  0x62   : > { %p3063_p6 = pnand %p3062_p1, %p3403_p5  ;;  %p3069_p2 = scmp.lt.s32.totalorder %s3067_s10, %s3061_s26 }
  0x64   : > { %p3064_p11 = pneg %p3063_p6  ;;  %p3070_p0 = por %p3069_p2, %p3068_p3 }
  0x66   : > { %p3071_p7 = pnand %p3070_p0, %p3064_p11 }
  0x68   : > { %3074 = shalt.err (!%p3071_p7)
}
  0x69   : > { %s3275_s6 = smov 128   ;;  %s3276_s23 = smov 8  }
  0x6a   : > { %s4325_s21 = scalar_lea.sflag [#allocation6], %s3475_s27  ;;  %s3516_s26 = scalar_lea.hbm %s4275_s0, %s3469_s29 }
  0x6b   : > { %2800 = dma.hbm_to_vmem [thread:$0]  (%p3403_p5), %s3481_s19, 256, %s3484_s16, %s4325_s21, %s3275_s6, %s3275_s6, %s3276_s23  }
  0x6c   : > { %s422_s8 = scalar_lea.vmem [#allocation2], %s3472_s20  ;;  %s3525_s12 = scalar_lea.hbm %s4277_s2, %s3469_s29 }
  0x6d   : > { %s429_s10 = sshll.u32 %s422_s8, 4  ;;  %s419_s11 = scalar_lea.sflag [#allocation3], %s3466_s28  ;;  %s3519_s10 = int_to_ptr.vmem [resolvable:$true] %s429_s10 }
  0x6e   : > { %s3075_s15 = scalar_lea.hbm %s3516_s26, 256  ;;  %s3079_s21 = scalar_lea.hbm %s4275_s0, 512 }
  0x6f   : > { %p3076_p7 = scmp.ne.s32.totalorder %s3516_s26, %s3075_s15  ;;  %p3080_p4 = scmp.lt.s32.totalorder %s3516_s26, %s4275_s0 }
  0x70   : > { %p3081_p12 = scmp.lt.s32.totalorder %s3079_s21, %s3075_s15 }
  0x71   : > { %p3077_p9 = pnand %p3076_p7, %p3403_p5 }
  0x72   : > { %p3082_p10 = por %p3081_p12, %p3080_p4 }
  0x73   : > { %p3078_p8 = pneg %p3077_p9 }
  0x75   : > { %p3083_p1 = pnand %p3082_p10, %p3078_p8 }
  0x77   : > { %3086 = shalt.err (!%p3083_p1)
}
  0x78   : > { %s3087_s1 = scalar_lea.vmem %s3519_s10, 256  ;;  %s3277_s24 = smov [#allocation2]  }
  0x79   : > { %p3088_p6 = scmp.ne.s32.totalorder %s3519_s10, %s3087_s1  ;;  %s3091_s8 = sshll.u32 %s3277_s24, 4  ;;  %s3092_s8 = int_to_ptr.vmem [resolvable:$false] %s3091_s8 }
  0x7a   : > { %s3093_s19 = scalar_lea.vmem %s3092_s8, 512  ;;  %p3094_p2 = scmp.lt.s32.totalorder %s3519_s10, %s3092_s8 }
  0x7b   : > { %p3089_p11 = pnand %p3088_p6, %p3403_p5  ;;  %p3095_p0 = scmp.lt.s32.totalorder %s3093_s19, %s3087_s1 }
  0x7d   : > { %p3090_p3 = pneg %p3089_p11  ;;  %p3096_p7 = por %p3095_p0, %p3094_p2 }
  0x7f   : > { %p3097_p9 = pnand %p3096_p7, %p3090_p3 }
  0x81   : > { %3100 = shalt.err (!%p3097_p9)
}
  0x82   : > { %2799 = dma.hbm_to_vmem [thread:$0]  (%p3403_p5), %s3516_s26, 256, %s3519_s10, %s419_s11, %s3275_s6, %s3275_s6, %s3276_s23  }
  0x83   : > { %s464_s15 = scalar_lea.vmem [#allocation7], %s3472_s20  ;;  %s3101_s21 = scalar_lea.hbm %s3525_s12, 256 }
  0x84   : > { %s471_s16 = sshll.u32 %s464_s15, 4  ;;  %p3102_p8 = scmp.ne.s32.totalorder %s3525_s12, %s3101_s21  ;;  %s472_s16 = int_to_ptr.vmem [resolvable:$true] %s471_s16 }
  0x85   : > { %s3105_s1 = scalar_lea.hbm %s4277_s2, 512  ;;  %p3106_p10 = scmp.lt.s32.totalorder %s3525_s12, %s4277_s2 }
  0x86   : > { %p3103_p4 = pnand %p3102_p8, %p3403_p5  ;;  %p3107_p1 = scmp.lt.s32.totalorder %s3105_s1, %s3101_s21 }
  0x88   : > { %p3104_p12 = pneg %p3103_p4  ;;  %p3108_p6 = por %p3107_p1, %p3106_p10 }
  0x8a   : > { %p3109_p11 = pnand %p3108_p6, %p3104_p12 }
  0x8c   : > { %3112 = shalt.err (!%p3109_p11)
}
  0x8d   : > { %s3113_s11 = scalar_lea.vmem %s472_s16, 256  ;;  %s3278_s26 = smov [#allocation7]  }
  0x8e   : > { %p3114_p3 = scmp.ne.s32.totalorder %s472_s16, %s3113_s11  ;;  %s3117_s10 = sshll.u32 %s3278_s26, 4  ;;  %s3118_s10 = int_to_ptr.vmem [resolvable:$false] %s3117_s10 }
  0x8f   : > { %s3119_s19 = scalar_lea.vmem %s3118_s10, 512  ;;  %p3120_p7 = scmp.lt.s32.totalorder %s472_s16, %s3118_s10 }
  0x90   : > { %p3115_p2 = pnand %p3114_p3, %p3403_p5  ;;  %p3121_p9 = scmp.lt.s32.totalorder %s3119_s19, %s3113_s11 }
  0x92   : > { %p3116_p0 = pneg %p3115_p2  ;;  %p3122_p8 = por %p3121_p9, %p3120_p7 }
  0x94   : > { %p3123_p4 = pnand %p3122_p8, %p3116_p0 }
  0x96   : > { %3126 = shalt.err (!%p3123_p4)
}
  0x97   : > { %s4326_s15 = scalar_lea.sflag [#allocation6], %s3475_s27  ;;  %s3577_s18 = scalar_lea.hbm %s4278_s3, %s3469_s29 }
  0x98   : > { %2801 = dma.hbm_to_vmem [thread:$0]  (%p3403_p5), %s3525_s12, 256, %s472_s16, %s4326_s15, %s3275_s6, %s3275_s6, %s3276_s23  }
  0x99   : > { %s485_s1 = scalar_lea.vmem [#allocation8], %s3472_s20  ;;  %s482_s8 = scalar_lea.sflag [#allocation9], %s3475_s27 }
  0x9a   : > { %s492_s24 = sshll.u32 %s485_s1, 4  ;;  %s3127_s11 = scalar_lea.hbm %s3577_s18, 256  ;;  %s3580_s24 = int_to_ptr.vmem [resolvable:$true] %s492_s24 }
  0x9b   : > { %p3128_p12 = scmp.ne.s32.totalorder %s3577_s18, %s3127_s11  ;;  %s3131_s16 = scalar_lea.hbm %s4278_s3, 512 }
  0x9c   : > { %p3132_p6 = scmp.lt.s32.totalorder %s3577_s18, %s4278_s3  ;;  %p3133_p11 = scmp.lt.s32.totalorder %s3131_s16, %s3127_s11 }
  0x9d   : > { %p3129_p10 = pnand %p3128_p12, %p3403_p5 }
  0x9e   : > { %p3134_p3 = por %p3133_p11, %p3132_p6 }
  0x9f   : > { %p3130_p1 = pneg %p3129_p10 }
  0xa1   : > { %p3135_p2 = pnand %p3134_p3, %p3130_p1 }
  0xa3   : > { %3138 = shalt.err (!%p3135_p2)
}
  0xa4   : > { %s3139_s20 = scalar_lea.vmem %s3580_s24, 256  ;;  %s3279_s15 = smov [#allocation8]  }
  0xa5   : > { %p3140_p0 = scmp.ne.s32.totalorder %s3580_s24, %s3139_s20  ;;  %s3143_s21 = sshll.u32 %s3279_s15, 4  ;;  %s3144_s21 = int_to_ptr.vmem [resolvable:$false] %s3143_s21 }
  0xa6   : > { %s3145_s30 = scalar_lea.vmem %s3144_s21, 512  ;;  %p3146_p8 = scmp.lt.s32.totalorder %s3580_s24, %s3144_s21 }
  0xa7   : > { %p3141_p7 = pnand %p3140_p0, %p3403_p5  ;;  %p3147_p4 = scmp.lt.s32.totalorder %s3145_s30, %s3139_s20 }
  0xa9   : > { %p3142_p9 = pneg %p3141_p7  ;;  %p3148_p12 = por %p3147_p4, %p3146_p8 }
  0xab   : > { %p3149_p10 = pnand %p3148_p12, %p3142_p9 }
  0xad   : > { %3152 = shalt.err (!%p3149_p10)
}
  0xae   : > { %2802 = dma.hbm_to_vmem [thread:$0]  (%p3403_p5), %s3577_s18, 256, %s3580_s24, %s482_s8, %s3275_s6, %s3275_s6, %s3276_s23  }
  0xaf   : > { %s2790_s1 = smul.u32 48, %s3466_s28  ;;  %s512_s12 = scalar_lea.hbm %s4279_s4, %s3469_s29 }
  0xb0   : > { %s2803_s16 = scalar_select %p3403_p5, [#allocation0], [#allocation24] }
  0xb1   : > { %s506_s19 = scalar_lea.vmem [#allocation10], %s2790_s1  ;;  %s3280_s6 = smov 512  }
  0xb2   : > { %s517_s10 = sld [smem:[%s2803_s16]]   ;;  %s525_s20 = sshll.u32 %s506_s19, 4  ;;  %s526_s20 = int_to_ptr.vmem [resolvable:$true] %s525_s20 }
  0xb3   : > { %2804 = sst [smem:[#allocation21]] (%p3403_p5), %s3280_s6  ;;  %s3281_s23 = smov 256  }
  0xb4   : > { %2805 = sst [smem:[#allocation21 + $0x1]] (%p3403_p5), %s3281_s23  ;;  %s3282_s28 = smov 2  }
  0xb5   : > { %2806 = sst [smem:[#allocation21 + $0x2]] (%p3403_p5), %s3282_s28  ;;  %s3283_s18 = smov 128  }
  0xb6   : > { %2807 = sst [smem:[#allocation21 + $0x3]] (%p3403_p5), %s3283_s18  ;;  %s3284_s21 = smov 8  }
  0xb7   : > { %2808 = sst [smem:[#allocation21 + $0x4]] (%p3403_p5), %s3283_s18  ;;  %s3285_s30 = smov 131072  }
  0xb8   : > { %s2305_s24 = sshll.u32 %s517_s10, 26  ;;  %2809 = sst [smem:[#allocation21 + $0x5]] (%p3403_p5), %s3284_s21 }
  0xb9   : > { %s2306_s15 = sadd.s32 134217728, %s2305_s24 }
  0xba   : > { %2810 = dma.general (%p3403_p5), %s512_s12, 768, %s526_s20, %s482_s8, %s3285_s30, [#allocation21], %s2306_s15, 0  }
  0xbb   : > { %s558_s16 = scalar_lea.hbm %s4280_s5, %s3469_s29  ;;  %s552_s19 = scalar_lea.vmem [#allocation11], %s2790_s1 }
  0xbc   : > { %s2811_s10 = scalar_select %p3403_p5, [#allocation0], [#allocation25] }
  0xbd   : > { %s571_s6 = sshll.u32 %s552_s19, 4  ;;  %s3286_s28 = smov 512   ;;  %s572_s6 = int_to_ptr.vmem [resolvable:$true] %s571_s6 }
  0xbe   : > { %s563_s23 = sld [smem:[%s2811_s10]]   ;;  %s3287_s8 = smov 256  }
  0xbf   : > { %2812 = sst [smem:[#allocation23]] (%p3403_p5), %s3286_s28  ;;  %s3288_s12 = smov 2  }
  0xc0   : > { %2813 = sst [smem:[#allocation23 + $0x1]] (%p3403_p5), %s3287_s8  ;;  %s3289_s20 = smov 128  }
  0xc1   : > { %2814 = sst [smem:[#allocation23 + $0x2]] (%p3403_p5), %s3288_s12  ;;  %s3290_s1 = smov 8  }
  0xc2   : > { %2815 = sst [smem:[#allocation23 + $0x3]] (%p3403_p5), %s3289_s20  ;;  %s549_s24 = scalar_lea.sflag [#allocation12], %s3475_s27 }
  0xc3   : > { %2816 = sst [smem:[#allocation23 + $0x4]] (%p3403_p5), %s3289_s20  ;;  %s3291_s15 = smov 131072  }
  0xc4   : > { %s2309_s29 = sshll.u32 %s563_s23, 26  ;;  %2817 = sst [smem:[#allocation23 + $0x5]] (%p3403_p5), %s3290_s1 }
  0xc5   : > { %s2310_s18 = sadd.s32 134217728, %s2309_s29 }
  0xc6   : > { %2818 = dma.general (%p3403_p5), %s558_s16, 768, %s572_s6, %s549_s24, %s3291_s15, [#allocation23], %s2310_s18, 0  }
  0xc7 PF: > { %596 = sbr.rel (%p3424_p13) target bundleno = 3035 (0xbdb), region = 64  ;;  %s3655_s21 = sand.u32 (!%p3424_p13), 1, %s3259_s22  }
  0xc8   : > { %s3658_s30 = sshll.u32 (!%p3424_p13), %s3655_s21, 4  ;;  %s599_s11 = scalar_lea.sflag (!%p3424_p13), [#allocation3], %s3655_s21 }
  0xc9   : > { %s602_s26 = scalar_lea.vmem (!%p3424_p13), [#allocation2], %s3658_s30  ;;  %p4327_p1 = scmp.ne.s32.totalorder (!%p3424_p13), %s4314_s14, 0 }
  0xcc   : > { %3222 = dma.done.wait (%p4327_p1), %s599_s11, 256  }
  0xcd   : > { %3224 = vsyncadd (%p4327_p1), %s599_s11, 4294967040  ;;  %s607_s13 = sand.u32 1, %s3385_s25   ;;  %s611_s27 = scalar_lea.vmem [#allocation5], %s3658_s30 }
  0xce   : > { %s608_s17 = scalar_lea.sflag [#allocation6], %s607_s13 }
  0xcf   : > { %3226 = dma.done.wait (%p4327_p1), %s608_s17, 512  }
  0xd0   : > { %3228 = vsyncadd (%p4327_p1), %s608_s17, 4294966784  ;;  %s620_s16 = scalar_lea.vmem [#allocation7], %s3658_s30  ;;  %s626_s10 = scalar_lea.sflag [#allocation9], %s607_s13 }
  0xd1   : > { %s629_s19 = scalar_lea.vmem [#allocation8], %s3658_s30 }
  0xd2   : > { %3230 = dma.done.wait (%p4327_p1), %s626_s10, 1024  }
  0xd3   : > { %3232 = vsyncadd (%p4327_p1), %s626_s10, 4294966272  ;;  %s2792_s6 = smul.u32 48, %s3655_s21  ;;  %s644_s28 = scalar_lea.sflag [#allocation12], %s607_s13 }
  0xd5   : > { %s3679_s23 = scalar_lea.vmem [#allocation10], %s2792_s6  ;;  %s3681_s8 = scalar_lea.vmem [#allocation11], %s2792_s6 }
  0xd6   : > { %3234 = dma.done.wait (%p4327_p1), %s644_s28, 768  }
  0xd7   : > { %3236 = vsyncadd (%p4327_p1), %s644_s28, 4294966528  ;;  %p4328_p5 = scmp.eq.s32.totalorder %s3385_s25, 0 }
  0xd9   : > { %3238 = dma.done.wait (%p4328_p5), [#allocation12], 1024   ;;  %p4329_p13 = pmov %p4328_p5 }
  0xda   : > { %p4330_p6 = pmov %p4328_p5 }
  0xdb   : > { %3240 = vsyncadd (%p4329_p13), [#allocation12], 4294966272 }
  0xdc   : > { %3242 = dma.done.wait (%p4330_p6), [#allocation15], 2048   ;;  %p4331_p11 = pmov %p4328_p5 }
  0xdd   : > { %v3292_v0 = vmov 0.0   ;;  %v733_v1 = vld [vmem:[%s611_s27] sm:$0xff]  ;;  %vm737_vm0 = vcmask 130048   ;;  %v734_v2 = vld [vmem:[%s611_s27 + $0x8] sm:$0xff]  ;;  %vm3293_vm1 = vmmov 0   ;;  %s4332_s1 = sld [smem:[#allocation39_spill]] }
  0xde   : > { %3244 = vsyncadd (%p4331_p11), [#allocation15], 4294965248  ;;  %2502 = vmatprep.subr.bf16.mxu1 %v3292_v0  ;;  %2528 = vmatprep.subr.bf16.mxu0 %v3292_v0  ;;  %v735_v3 = vand.u32 2147483647, %v733_v1  ;;  %v736_v4 = vand.u32 2147483647, %v734_v2 }
  0xdf   : > { %2504 = vmatprep.mubr.msk.bf16.mxu1 %vm3293_vm1, %v3292_v0  ;;  %2544 = vmatprep.mubr.msk.bf16.mxu0 %vm3293_vm1, %v3292_v0  ;;  %v731_v14 = vld [vmem:[%s602_s26] sm:$0xff]  ;;  %v732_v16 = vld [vmem:[%s602_s26 + $0x8] sm:$0xff]  ;;  %v772_v24 = vmul.f32 0.0065715867, %v733_v1  ;;  %v773_v27 = vmul.f32 0.0065715867, %v734_v2 }
  0xe0   : > { %v738_v5 = vsel %vm737_vm0, %v735_v3, 0.0  ;;  %v741_v6 = vsel %vm737_vm0, %v736_v4, 0.0  ;;  %v764_v15 = vld [vmem:[%s620_s16] sm:$0xff]  ;;  %v765_v17 = vld [vmem:[%s620_s16 + $0x8] sm:$0xff]  ;;  %v762_v20 = vmul.f32 0.0065715867, %v731_v14 }
  0xe1   : > { %739 = vadd.xlane.f32.xlu0 %v738_v5  ;;  %v750_v7 = vadd.f32 %v741_v6, %v738_v5  ;;  %v774_v18 = vld [vmem:[%s629_s19] sm:$0xff]  ;;  %v775_v19 = vld [vmem:[%s629_s19 + $0x8] sm:$0xff]  ;;  %v766_v21 = vmul.f32 0.9999784, %v764_v15  ;;  %v763_v22 = vmul.f32 0.0065715867, %v732_v16 }
  0xe2   : > { %v767_v23 = vmul.f32 0.9999784, %v765_v17  ;;  %v776_v25 = vmul.f32 0.9999784, %v774_v18  ;;  %v777_v28 = vmul.f32 0.9999784, %v775_v19 }
  0xe3   : > { %v751_v8 = vrot.slane %v750_v7, 4  ;;  %v768_v31 = vadd.f32 %v766_v21, %v762_v20  ;;  %v3747_v45 = vld [vmem:[#allocation13 + $0x38] sm:$0xff]   ;;  %v3752_v46 = vld [vmem:[#allocation13 + $0x30] sm:$0xff]   ;;  %v3758_v47 = vld [vmem:[#allocation13 + $0x28] sm:$0xff]   ;;  %s2376_s18 = sshll.u32 %s3385_s25, 8  ;;  %s722_s24 = scalar_lea.vmem [#allocation17], %s3658_s30 }
  0xe4   : > { %v769_v32 = vadd.f32 %v767_v23, %v763_v22  ;;  %v778_v34 = vadd.f32 %v776_v25, %v772_v24  ;;  %v779_v35 = vadd.f32 %v777_v28, %v773_v27  ;;  %v3762_v48 = vld [vmem:[#allocation13 + $0x20] sm:$0xff]   ;;  %v3766_v49 = vld [vmem:[#allocation13 + $0x18] sm:$0xff]   ;;  %v3770_v50 = vld [vmem:[#allocation13 + $0x10] sm:$0xff]   ;;  %s2027_s15 = sshll.u32 %s722_s24, 4  ;;  %s4333_s13 = sld [smem:[#allocation45_spill]]  ;;  %s4184_s15 = int_to_ptr.vmem [resolvable:$true] %s2027_s15 }
  0xe5   : > { %742 = vadd.xlane.f32.xlu0 %v741_v6  ;;  %v752_v9 = vadd.f32 %v751_v8, %v750_v7  ;;  %v3774_v51 = vld [vmem:[#allocation13 + $0x8] sm:$0xff]   ;;  %v3779_v52 = vld [vmem:[#allocation13] sm:$0xff]   ;;  %v3783_v53 = vld [vmem:[#allocation14 + $0x38] sm:$0xff]   ;;  %s2009_s27 = scalar_lea.sflag [#allocation4], %s3655_s21  ;;  %s3153_s16 = scalar_lea.vmem %s4184_s15, 256 }
  0xe6   : > { %2529 = vmatpush3.bf16.msra.mxu0 %v3783_v53  ;;  %v3786_v54 = vld [vmem:[#allocation14 + $0x30] sm:$0xff]   ;;  %v3791_v58 = vld [vmem:[#allocation16 + $0x38] sm:$0xff]   ;;  %v3800_v62 = vld [vmem:[#allocation16 + $0x28] sm:$0xff]   ;;  %p3154_p3 = scmp.ne.s32.totalorder %s4184_s15, %s3153_s16  ;;  %p4334_p2 = scmp.ne.s32.totalorder %s4332_s1, 0 }
  0xe7   : > { %v753_v10 = vrot.slane %v752_v9, 2  ;;  %2530 = vmatprep.subr.bf16.mxu0 %v3292_v0  ;;  %v3794_v61 = vld [vmem:[#allocation16 + $0x30] sm:$0xff]   ;;  %v3804_v63 = vld [vmem:[#allocation16 + $0x20] sm:$0xff]   ;;  %v3808_v1 = vld [vmem:[#allocation16 + $0x18] sm:$0xff]   ;;  %s3294_s10 = smov [#allocation17]  }
  0xe8   : > { %v3812_v2 = vld [vmem:[#allocation16 + $0x10] sm:$0xff]   ;;  %v3816_v3 = vld [vmem:[#allocation16 + $0x8] sm:$0xff]   ;;  %v3820_v4 = vld [vmem:[#allocation16] sm:$0xff]   ;;  %p3155_p0 = pnand %p3154_p3, %p4334_p2  ;;  %s3157_s19 = sshll.u32 %s3294_s10, 4  ;;  %s3158_s19 = int_to_ptr.vmem [resolvable:$false] %s3157_s19 }
  0xe9   : > { %v754_v11 = vadd.f32 %v753_v10, %v752_v9  ;;  %v3832_v5 = vld [vmem:[#allocation14 + $0x28] sm:$0xff]   ;;  %v3838_v6 = vld [vmem:[#allocation14 + $0x20] sm:$0xff]   ;;  %v3844_v7 = vld [vmem:[#allocation14 + $0x18] sm:$0xff]   ;;  %s3159_s6 = scalar_lea.vmem %s3158_s19, 512  ;;  %p3160_p9 = scmp.lt.s32.totalorder %s4184_s15, %s3158_s19 }
  0xea   : > { %2531 = vmatpush3.bf16.msra.mxu0 %v3786_v54  ;;  %v3847_v8 = vld [vmem:[#allocation14 + $0x10] sm:$0xff]   ;;  %v3853_v9 = vld [vmem:[#allocation14 + $0x8] sm:$0xff]   ;;  %v3859_v10 = vld [vmem:[#allocation14] sm:$0xff]   ;;  %s4182_s17 = scalar_lea.hbm %s4333_s13, %s2376_s18  ;;  %p3156_p7 = pneg %p3155_p0 }
  0xeb   : > { %v755_v12 = vrot.slane %v754_v11, 1  ;;  %2532 = vmatprep.subr.bf16.mxu0 %v3292_v0  ;;  %v3883_v28 = vld [vmem:[%s4284_s9] ss:$0 sm:$0xff]  ;;  %p3161_p8 = scmp.lt.s32.totalorder %s3159_s6, %s3153_s16 }
  0xed   : > { %v756_v13 = vadd.f32 %v755_v12, %v754_v11  ;;  %v3871_v11 = vld [vmem:[%s4282_s7] ss:$0 sm:$0xff]  ;;  %p3162_p4 = por %p3161_p8, %p3160_p9 }
  0xee   : > { %2533 = vmatpush3.bf16.msra.mxu0 %v3832_v5 }
  0xef   : > { %vm757_vm2 = vcmp.gt.f32.partialorder %v756_v13, 1e-05  ;;  %2534 = vmatprep.subr.bf16.mxu0 %v3292_v0  ;;  %p3163_p12 = pnand %p3162_p4, %p3156_p7 }
  0xf0   : > { %v2323_v29 = vsel %vm757_vm2, 1.0, %v3292_v0 }
  0xf2   : > { %2535 = vmatpush3.bf16.msra.mxu0 %v3838_v6 }
  0xf3   : > { %2536 = vmatprep.subr.bf16.mxu0 %v3292_v0 }
  0xf6   : > { %2537 = vmatpush3.bf16.msra.mxu0 %v3844_v7 }
  0xf7   : > { %2538 = vmatprep.subr.bf16.mxu0 %v3292_v0 }
  0xfa   : > { %2539 = vmatpush3.bf16.msra.mxu0 %v3847_v8 }
  0xfb   : > { %2540 = vmatprep.subr.bf16.mxu0 %v3292_v0 }
  0xfe   : > { %2541 = vmatpush3.bf16.msra.mxu0 %v3853_v9 }
  0xff   : > { %2542 = vmatprep.subr.bf16.mxu0 %v3292_v0 }
 0x102   : > { %2543 = vmatpush3.bf16.msra.mxu0 %v3859_v10 }
 0x103   : > { %2568 = vmatprep.subr.bf16.mxu0 %v3292_v0 }
 0x16a   : > { %v740_v26 = vpop.xlane.xlu0 %739 }
 0x16b   : > { %vm744_vm3 = vcmp.gt.f32.partialorder %v740_v26, 1e-05 }
 0x16c   : > { %v3717_v30 = vsel %vm744_vm3, 1.0, %v3292_v0 }
 0x16d   : > { %v3720_v36 = vmul.f32 %v2323_v29, %v3717_v30  ;;  %v3729_v39 = vmul.f32 %v3717_v30, %v768_v31 }
 0x16e   : > { %v743_v33 = vpop.xlane.xlu0 %742 }
 0x16f   : > { %vm745_vm4 = vcmp.gt.f32.partialorder %v743_v33, 1e-05  ;;  %v3739_v42 = vmul.f32 %v778_v34, %v3720_v36 }
 0x170   : > { %v3723_v37 = vsel %vm745_vm4, 1.0, %v3292_v0 }
 0x171   : > { %v3726_v38 = vmul.f32 %v2323_v29, %v3723_v37  ;;  %v3732_v40 = vmul.f32 %v3723_v37, %v769_v32  ;;  %v1211_v32 = vmul.f32 2.4975, %v3729_v39 }
 0x173   : > { %v3736_v41 = vpack.c.bf16 %v3732_v40, %v3729_v39  ;;  %v3742_v43 = vmul.f32 %v779_v35, %v3726_v38  ;;  %v1227_v35 = vld [vmem:[%s3679_s23] sm:$0xff] }
 0x175   : > { %2503 = vmatpush3.bf16.msra.mxu1 %v3736_v41  ;;  %v797_v44 = vpack.c.bf16 %v3742_v43, %v3739_v42 }
 0x176   : > { %2508 = vmatprep.subr.bf16.mxu1 %v3292_v0 }
 0x178   : > { %2505 = vmatmul.mubr.msk.bf16.vlgmr.msra.gmra.mxu1 %vm737_vm0, %v797_v44  ;;  %v1213_v44 = vadd.f32 %v1211_v32, %v3729_v39 }
 0x179   : > { %2509 = vmatpush3.bf16.msra.mxu1 %v3747_v45  ;;  %2524 = vmatprep.mubr.msk.bf16.mxu1 %vm3293_vm1, %v3292_v0 }
 0x17a   : > { %2510 = vmatprep.subr.bf16.mxu1 %v3292_v0 }
 0x17d   : > { %2511 = vmatpush3.bf16.msra.mxu1 %v3752_v46 }
 0x17e   : > { %2512 = vmatprep.subr.bf16.mxu1 %v3292_v0 }
 0x181   : > { %2513 = vmatpush3.bf16.msra.mxu1 %v3758_v47 }
 0x182   : > { %2514 = vmatprep.subr.bf16.mxu1 %v3292_v0 }
 0x185   : > { %2515 = vmatpush3.bf16.msra.mxu1 %v3762_v48 }
 0x186   : > { %2516 = vmatprep.subr.bf16.mxu1 %v3292_v0 }
 0x189   : > { %2517 = vmatpush3.bf16.msra.mxu1 %v3766_v49 }
 0x18a   : > { %2518 = vmatprep.subr.bf16.mxu1 %v3292_v0 }
 0x18d   : > { %2519 = vmatpush3.bf16.msra.mxu1 %v3770_v50 }
 0x18e   : > { %2520 = vmatprep.subr.bf16.mxu1 %v3292_v0 }
 0x191   : > { %2521 = vmatpush3.bf16.msra.mxu1 %v3774_v51 }
 0x192   : > { %2522 = vmatprep.subr.bf16.mxu1 %v3292_v0 }
 0x195   : > { %2523 = vmatpush3.bf16.msra.mxu1 %v3779_v52 }
 0x196   : > { %2548 = vmatprep.subr.bf16.mxu1 %v3292_v0 }
 0x238   : > { %v835_v55 = vpop.f32.mrf.mxu1 }
 0x23a   : > { %v2506_v56 = vpop.f32.mrf.mxu1 }
 0x23c   : > { %v838_v57 = vpop.f32.mrf.mxu1 }
 0x23d   : > { %v842_v59 = vpack.c.bf16 %v838_v57, %v835_v55  ;;  %v1212_v57 = vmul.f32 2.4975, %v3732_v40 }
 0x23e   : > { %v2507_v60 = vpop.f32.mrf.mxu1 }
 0x23f   : > { %2525 = vmatmul.mubr.bf16.vlgmr.msra.gmra.mxu1 %v842_v59  ;;  %v1228_v59 = vld [vmem:[%s3679_s23 + $0x8] sm:$0xff] }
 0x240   : > { %2549 = vmatpush3.bf16.msra.mxu1 %v3791_v58  ;;  %2564 = vmatprep.mubr.msk.bf16.mxu1 %vm3293_vm1, %v3292_v0 }
 0x241   : > { %2550 = vmatprep.subr.bf16.mxu1 %v3292_v0 }
 0x244   : > { %2551 = vmatpush3.bf16.msra.mxu1 %v3794_v61 }
 0x245   : > { %2552 = vmatprep.subr.bf16.mxu1 %v3292_v0 }
 0x248   : > { %2553 = vmatpush3.bf16.msra.mxu1 %v3800_v62 }
 0x249   : > { %2554 = vmatprep.subr.bf16.mxu1 %v3292_v0 }
 0x24c   : > { %2555 = vmatpush3.bf16.msra.mxu1 %v3804_v63 }
 0x24d   : > { %2556 = vmatprep.subr.bf16.mxu1 %v3292_v0 }
 0x250   : > { %2557 = vmatpush3.bf16.msra.mxu1 %v3808_v1 }
 0x251   : > { %2558 = vmatprep.subr.bf16.mxu1 %v3292_v0 }
 0x254   : > { %2559 = vmatpush3.bf16.msra.mxu1 %v3812_v2 }
 0x255   : > { %2560 = vmatprep.subr.bf16.mxu1 %v3292_v0 }
 0x258   : > { %2561 = vmatpush3.bf16.msra.mxu1 %v3816_v3 }
 0x259   : > { %2562 = vmatprep.subr.bf16.mxu1 %v3292_v0 }
 0x25c   : > { %2563 = vmatpush3.bf16.msra.mxu1 %v3820_v4 }
 0x25d   : > { %2600 = vmatprep.subr.bf16.mxu1 %v3292_v0 }
 0x25f   : > { %2565 = vmatmul.mubr.bf16.vlgmr.msra.gmra.mxu1 %v3736_v41 }
 0x260   : > { %2601 = vmatpush3.bf16.msra.mxu1 %v3783_v53  ;;  %2616 = vmatprep.mubr.msk.bf16.mxu1 %vm3293_vm1, %v3292_v0 }
 0x261   : > { %2602 = vmatprep.subr.bf16.mxu1 %v3292_v0 }
 0x264   : > { %2603 = vmatpush3.bf16.msra.mxu1 %v3786_v54 }
 0x265   : > { %2604 = vmatprep.subr.bf16.mxu1 %v3292_v0 }
 0x268   : > { %2605 = vmatpush3.bf16.msra.mxu1 %v3832_v5 }
 0x269   : > { %2606 = vmatprep.subr.bf16.mxu1 %v3292_v0 }
 0x26c   : > { %2607 = vmatpush3.bf16.msra.mxu1 %v3838_v6 }
 0x26d   : > { %2608 = vmatprep.subr.bf16.mxu1 %v3292_v0 }
 0x270   : > { %2609 = vmatpush3.bf16.msra.mxu1 %v3844_v7 }
 0x271   : > { %2610 = vmatprep.subr.bf16.mxu1 %v3292_v0 }
 0x274   : > { %2611 = vmatpush3.bf16.msra.mxu1 %v3847_v8 }
 0x275   : > { %2612 = vmatprep.subr.bf16.mxu1 %v3292_v0 }
 0x278   : > { %2613 = vmatpush3.bf16.msra.mxu1 %v3853_v9 }
 0x279   : > { %2614 = vmatprep.subr.bf16.mxu1 %v3292_v0 }
 0x27c   : > { %2615 = vmatpush3.bf16.msra.mxu1 %v3859_v10 }
 0x27d   : > { %2640 = vmatprep.subr.bf16.mxu1 %v3292_v0 }
 0x2ff   : > { %v941_v12 = vpop.f32.mrf.mxu1 }
 0x300   : > { %v942_v13 = vadd.f32 %v3871_v11, %v941_v12 }
 0x301   : > { %v2526_v14 = vpop.f32.mrf.mxu1 }
 0x302   : > { %2939 = vtanh.f32 %v942_v13  ;;  %v1229_v13 = vmul.f32 2.2349496, %v1227_v35  ;;  %v1234_v35 = vld [vmem:[%s3681_s8 + $0x8] sm:$0xff] }
 0x303   : > { %v944_v15 = vpop.f32.mrf.mxu1 }
 0x304   : > { %v945_v16 = vadd.f32 %v3871_v11, %v944_v15  ;;  %v1214_v15 = vadd.f32 %v1212_v57, %v3732_v40 }
 0x305   : > { %v2527_v17 = vpop.f32.mrf.mxu1 }
 0x306   : > { %2941 = vtanh.f32 %v945_v16  ;;  %v1230_v17 = vmul.f32 2.2349496, %v1228_v59 }
 0x30f   : > { %v2940_v18 = vpop.eup %2939 }
 0x313   : > { %v2942_v19 = vpop.eup %2941 }
 0x314   : > { %v950_v20 = vpack.c.bf16 %v2942_v19, %v2940_v18 }
 0x316   : > { %2545 = vmatmul.mubr.bf16.vlgmr.msra.gmra.mxu0 %v950_v20 }
 0x317   : > { %2570 = vmatprep.mubr.msk.bf16.mxu0 %vm3293_vm1, %v3292_v0 }
 0x31f   : > { %v1156_v21 = vpop.f32.mrf.mxu1 }
 0x320   : > { %2943 = vtanh.f32 %v1156_v21 }
 0x321   : > { %v2566_v22 = vpop.f32.mrf.mxu1 }
 0x323   : > { %v1159_v23 = vpop.f32.mrf.mxu1 }
 0x324   : > { %2945 = vtanh.f32 %v1159_v23 }
 0x325   : > { %v2567_v24 = vpop.f32.mrf.mxu1 }
 0x326   : > { %v1219_v24 = vmul.f32 2.4975, %v3739_v42 }
 0x32d   : > { %v2944_v25 = vpop.eup %2943 }
 0x331   : > { %v2946_v26 = vpop.eup %2945 }
 0x332   : > { %v1165_v27 = vpack.c.bf16 %v2946_v26, %v2944_v25 }
 0x334   : > { %2569 = vmatpush3.bf16.xpose.msra.mxu0 %v1165_v27 }
 0x335   : > { %2574 = vmatprep.subr.bf16.mxu0 %v3292_v0 }
 0x33b   : > { %2571 = vmatmul.mubr.bf16.vlgmr.msra.gmra.mxu0 %v1165_v27  ;;  %v1233_v27 = vld [vmem:[%s3681_s8] sm:$0xff] }
 0x33c   : > { %2576 = vmatprep.mubr.msk.bf16.mxu0 %vm3293_vm1, %v3292_v0 }
 0x3d6   : > { %v1049_v29 = vpop.f32.mrf.mxu0 }
 0x3d7   : > { %v1050_v31 = vadd.f32 %v3883_v28, %v1049_v29 }
 0x3d8   : > { %v2546_v33 = vpop.f32.mrf.mxu0 }
 0x3d9   : > { %v1056_v34 = vmul.f32 %v3717_v30, %v1050_v31  ;;  %v1221_v31 = vadd.f32 %v1219_v24, %v3739_v42 }
 0x3da   : > { %v1052_v41 = vpop.f32.mrf.mxu0 }
 0x3db   : > { %v1215_v55 = vmul.f32 4.995, %v1056_v34  ;;  %v1053_v56 = vadd.f32 %v3883_v28, %v1052_v41  ;;  %v1220_v34 = vmul.f32 2.4975, %v3742_v43 }
 0x3dc   : > { %v2547_v60 = vpop.f32.mrf.mxu0 }
 0x3dd   : > { %v1217_v12 = vadd.f32 %v1215_v55, %v1213_v44  ;;  %v1057_v14 = vmul.f32 %v3723_v37, %v1053_v56  ;;  %v1235_v55 = vmul.f32 2.2349496, %v1233_v27  ;;  %v1222_v57 = vadd.f32 %v1220_v34, %v3742_v43 }
 0x3de   : > { %v1236_v60 = vmul.f32 2.2349496, %v1234_v35 }
 0x3df   : > { %v1216_v16 = vmul.f32 4.995, %v1057_v14  ;;  %v1231_v18 = vadd.f32 %v1229_v13, %v1217_v12 }
 0x3e1   : > { %v1218_v19 = vadd.f32 %v1216_v16, %v1214_v15  ;;  %v3896_v39 = vmul.f32 %v3717_v30, %v1231_v18 }
 0x3e3   : > { %v1232_v20 = vadd.f32 %v1230_v17, %v1218_v19 }
 0x3e5   : > { %v3899_v21 = vmul.f32 %v3723_v37, %v1232_v20 }
 0x3e7   : > { %v3903_v22 = vpack.c.bf16 %v3899_v21, %v3896_v39 }
 0x3e9   : > { %2575 = vmatpush3.bf16.msra.mxu0 %v3903_v22 }
 0x3ea   : > { %2580 = vmatprep.subr.bf16.mxu0 %v3292_v0 }
 0x3fb   : > { %v1200_v40 = vpop.f32.mrf.mxu0 }
 0x3fc   : > { %v1207_v23 = vmul.f32 0.0078125, %v1200_v40 }
 0x3fd   : > { %v2572_v25 = vpop.f32.mrf.mxu0 }
 0x3fe   : > { %v1209_v26 = vmul.f32 %v1207_v23, %v3720_v36 }
 0x3ff   : > { %v1203_v29 = vpop.f32.mrf.mxu0 }
 0x400   : > { %v1223_v32 = vmul.f32 4.995, %v1209_v26  ;;  %v1208_v33 = vmul.f32 0.0078125, %v1203_v29 }
 0x401   : > { %v2573_v41 = vpop.f32.mrf.mxu0 }
 0x402   : > { %v1225_v44 = vadd.f32 %v1223_v32, %v1221_v31  ;;  %v1210_v56 = vmul.f32 %v1208_v33, %v3726_v38 }
 0x404   : > { %v1224_v59 = vmul.f32 4.995, %v1210_v56  ;;  %v1237_v12 = vadd.f32 %v1235_v55, %v1225_v44 }
 0x406   : > { %v1226_v13 = vadd.f32 %v1224_v59, %v1222_v57  ;;  %v3916_v15 = vmul.f32 %v1237_v12, %v3720_v36  ;;  %v1466_v59 = vmul.f32 1.6699908, %v3896_v39 }
 0x408   : > { %v1238_v14 = vadd.f32 %v1236_v60, %v1226_v13  ;;  %v2352_v13 = vld [vmem:[%s3679_s23 + $0x10] sm:$0xff] }
 0x40a   : > { %v3919_v42 = vmul.f32 %v1238_v14, %v3726_v38 }
 0x40c   : > { %v1244_v16 = vpack.c.bf16 %v3919_v42, %v3916_v15 }
 0x40e   : > { %2577 = vmatmul.mubr.msk.bf16.vlgmr.msra.gmra.mxu0 %vm737_vm0, %v1244_v16  ;;  %v1468_v16 = vadd.f32 %v1466_v59, %v3896_v39 }
 0x40f   : > { %2581 = vmatpush3.bf16.msra.mxu0 %v3747_v45  ;;  %2596 = vmatprep.mubr.msk.bf16.mxu0 %vm3293_vm1, %v3292_v0 }
 0x410   : > { %2582 = vmatprep.subr.bf16.mxu0 %v3292_v0 }
 0x413   : > { %2583 = vmatpush3.bf16.msra.mxu0 %v3752_v46 }
 0x414   : > { %2584 = vmatprep.subr.bf16.mxu0 %v3292_v0 }
 0x417   : > { %2585 = vmatpush3.bf16.msra.mxu0 %v3758_v47 }
 0x418   : > { %2586 = vmatprep.subr.bf16.mxu0 %v3292_v0 }
 0x41b   : > { %2587 = vmatpush3.bf16.msra.mxu0 %v3762_v48 }
 0x41c   : > { %2588 = vmatprep.subr.bf16.mxu0 %v3292_v0 }
 0x41f   : > { %2589 = vmatpush3.bf16.msra.mxu0 %v3766_v49 }
 0x420   : > { %2590 = vmatprep.subr.bf16.mxu0 %v3292_v0 }
 0x423   : > { %2591 = vmatpush3.bf16.msra.mxu0 %v3770_v50 }
 0x424   : > { %2592 = vmatprep.subr.bf16.mxu0 %v3292_v0 }
 0x427   : > { %2593 = vmatpush3.bf16.msra.mxu0 %v3774_v51 }
 0x428   : > { %2594 = vmatprep.subr.bf16.mxu0 %v3292_v0 }
 0x42b   : > { %2595 = vmatpush3.bf16.msra.mxu0 %v3779_v52 }
 0x42c   : > { %2620 = vmatprep.subr.bf16.mxu0 %v3292_v0 }
 0x4ce   : > { %v1282_v43 = vpop.f32.mrf.mxu0 }
 0x4d0   : > { %v2578_v17 = vpop.f32.mrf.mxu0 }
 0x4d2   : > { %v1285_v18 = vpop.f32.mrf.mxu0 }
 0x4d3   : > { %v1289_v19 = vpack.c.bf16 %v1285_v18, %v1282_v43  ;;  %v1467_v18 = vmul.f32 1.6699908, %v3899_v21 }
 0x4d4   : > { %v2579_v20 = vpop.f32.mrf.mxu0 }
 0x4d5   : > { %2597 = vmatmul.mubr.bf16.vlgmr.msra.gmra.mxu0 %v1289_v19  ;;  %v2353_v19 = vld [vmem:[%s3679_s23 + $0x18] sm:$0xff] }
 0x4d6   : > { %2621 = vmatpush3.bf16.msra.mxu0 %v3791_v58  ;;  %2636 = vmatprep.mubr.msk.bf16.mxu0 %vm3293_vm1, %v3292_v0 }
 0x4d7   : > { %2622 = vmatprep.subr.bf16.mxu0 %v3292_v0 }
 0x4da   : > { %2623 = vmatpush3.bf16.msra.mxu0 %v3794_v61 }
 0x4db   : > { %2624 = vmatprep.subr.bf16.mxu0 %v3292_v0 }
 0x4de   : > { %2625 = vmatpush3.bf16.msra.mxu0 %v3800_v62 }
 0x4df   : > { %2626 = vmatprep.subr.bf16.mxu0 %v3292_v0 }
 0x4e2   : > { %2627 = vmatpush3.bf16.msra.mxu0 %v3804_v63 }
 0x4e3   : > { %2628 = vmatprep.subr.bf16.mxu0 %v3292_v0 }
 0x4e6   : > { %2629 = vmatpush3.bf16.msra.mxu0 %v3808_v1 }
 0x4e7   : > { %2630 = vmatprep.subr.bf16.mxu0 %v3292_v0 }
 0x4ea   : > { %2631 = vmatpush3.bf16.msra.mxu0 %v3812_v2 }
 0x4eb   : > { %2632 = vmatprep.subr.bf16.mxu0 %v3292_v0 }
 0x4ee   : > { %2633 = vmatpush3.bf16.msra.mxu0 %v3816_v3 }
 0x4ef   : > { %2634 = vmatprep.subr.bf16.mxu0 %v3292_v0 }
 0x4f2   : > { %2635 = vmatpush3.bf16.msra.mxu0 %v3820_v4 }
 0x4f3   : > { %2672 = vmatprep.subr.bf16.mxu0 %v3292_v0 }
 0x4f5   : > { %2637 = vmatmul.mubr.bf16.vlgmr.msra.gmra.mxu0 %v3903_v22 }
 0x4f6   : > { %2673 = vmatpush3.bf16.msra.mxu0 %v3783_v53  ;;  %2688 = vmatprep.mubr.msk.bf16.mxu0 %vm3293_vm1, %v3292_v0 }
 0x4f7   : > { %2674 = vmatprep.subr.bf16.mxu0 %v3292_v0 }
 0x4fa   : > { %2675 = vmatpush3.bf16.msra.mxu0 %v3786_v54 }
 0x4fb   : > { %2676 = vmatprep.subr.bf16.mxu0 %v3292_v0 }
 0x4fe   : > { %2677 = vmatpush3.bf16.msra.mxu0 %v3832_v5 }
 0x4ff   : > { %2678 = vmatprep.subr.bf16.mxu0 %v3292_v0 }
 0x502   : > { %2679 = vmatpush3.bf16.msra.mxu0 %v3838_v6 }
 0x503   : > { %2680 = vmatprep.subr.bf16.mxu0 %v3292_v0 }
 0x506   : > { %2681 = vmatpush3.bf16.msra.mxu0 %v3844_v7 }
 0x507   : > { %2682 = vmatprep.subr.bf16.mxu0 %v3292_v0 }
 0x50a   : > { %2683 = vmatpush3.bf16.msra.mxu0 %v3847_v8 }
 0x50b   : > { %2684 = vmatprep.subr.bf16.mxu0 %v3292_v0 }
 0x50e   : > { %2685 = vmatpush3.bf16.msra.mxu0 %v3853_v9 }
 0x50f   : > { %2686 = vmatprep.subr.bf16.mxu0 %v3292_v0 }
 0x512   : > { %2687 = vmatpush3.bf16.msra.mxu0 %v3859_v10 }
 0x513   : > { %2712 = vmatprep.subr.bf16.mxu0 %v3292_v0 }
 0x595   : > { %v1324_v22 = vpop.f32.mrf.mxu0 }
 0x596   : > { %v1325_v40 = vadd.f32 %v3871_v11, %v1324_v22 }
 0x597   : > { %v2598_v23 = vpop.f32.mrf.mxu0 }
 0x598   : > { %2947 = vtanh.f32 %v1325_v40  ;;  %v1485_v40 = vmul.f32 1.8275616, %v2352_v13  ;;  %v2355_v13 = vld [vmem:[%s3681_s8 + $0x18] sm:$0xff] }
 0x599   : > { %v1327_v24 = vpop.f32.mrf.mxu0 }
 0x59a   : > { %v1328_v25 = vadd.f32 %v3871_v11, %v1327_v24  ;;  %v1469_v24 = vadd.f32 %v1467_v18, %v3899_v21 }
 0x59b   : > { %v2599_v26 = vpop.f32.mrf.mxu0 }
 0x59c   : > { %2949 = vtanh.f32 %v1328_v25  ;;  %v1486_v26 = vmul.f32 1.8275616, %v2353_v19 }
 0x5a5   : > { %v2948_v27 = vpop.eup %2947 }
 0x5a9   : > { %v2950_v29 = vpop.eup %2949 }
 0x5aa   : > { %v1333_v31 = vpack.c.bf16 %v2950_v29, %v2948_v27 }
 0x5ac   : > { %2617 = vmatmul.mubr.bf16.vlgmr.msra.gmra.mxu1 %v1333_v31 }
 0x5ad   : > { %2642 = vmatprep.mubr.msk.bf16.mxu1 %vm3293_vm1, %v3292_v0 }
 0x5b5   : > { %v1411_v32 = vpop.f32.mrf.mxu0 }
 0x5b6   : > { %2951 = vtanh.f32 %v1411_v32 }
 0x5b7   : > { %v2638_v33 = vpop.f32.mrf.mxu0 }
 0x5b9   : > { %v1414_v34 = vpop.f32.mrf.mxu0 }
 0x5ba   : > { %2953 = vtanh.f32 %v1414_v34 }
 0x5bb   : > { %v2639_v35 = vpop.f32.mrf.mxu0 }
 0x5bc   : > { %v1474_v35 = vmul.f32 1.6699908, %v3916_v15 }
 0x5c3   : > { %v2952_v41 = vpop.eup %2951 }
 0x5c7   : > { %v2954_v44 = vpop.eup %2953 }
 0x5c8   : > { %v1420_v55 = vpack.c.bf16 %v2954_v44, %v2952_v41 }
 0x5ca   : > { %2641 = vmatpush3.bf16.xpose.msra.mxu1 %v1420_v55 }
 0x5cb   : > { %2646 = vmatprep.subr.bf16.mxu1 %v3292_v0 }
 0x5d1   : > { %2643 = vmatmul.mubr.bf16.vlgmr.msra.gmra.mxu1 %v1420_v55  ;;  %v2354_v55 = vld [vmem:[%s3681_s8 + $0x10] sm:$0xff] }
 0x5d2   : > { %2648 = vmatprep.mubr.msk.bf16.mxu1 %vm3293_vm1, %v3292_v0 }
 0x66c   : > { %v1368_v56 = vpop.f32.mrf.mxu1 }
 0x66d   : > { %v1369_v57 = vadd.f32 %v3883_v28, %v1368_v56 }
 0x66e   : > { %v2618_v60 = vpop.f32.mrf.mxu1 }
 0x66f   : > { %v1375_v12 = vmul.f32 %v3717_v30, %v1369_v57  ;;  %v1476_v57 = vadd.f32 %v1474_v35, %v3916_v15 }
 0x670   : > { %v1371_v14 = vpop.f32.mrf.mxu1 }
 0x671   : > { %v1470_v43 = vmul.f32 3.3399816, %v1375_v12  ;;  %v1372_v17 = vadd.f32 %v3883_v28, %v1371_v14  ;;  %v1475_v12 = vmul.f32 1.6699908, %v3919_v42 }
 0x672   : > { %v2619_v20 = vpop.f32.mrf.mxu1 }
 0x673   : > { %v1472_v22 = vadd.f32 %v1470_v43, %v1468_v16  ;;  %v1376_v23 = vmul.f32 %v3723_v37, %v1372_v17  ;;  %v1492_v43 = vmul.f32 1.8275616, %v2354_v55  ;;  %v1477_v18 = vadd.f32 %v1475_v12, %v3919_v42 }
 0x674   : > { %v1493_v20 = vmul.f32 1.8275616, %v2355_v13 }
 0x675   : > { %v1471_v25 = vmul.f32 3.3399816, %v1376_v23  ;;  %v1487_v27 = vadd.f32 %v1485_v40, %v1472_v22 }
 0x677   : > { %v1473_v29 = vadd.f32 %v1471_v25, %v1469_v24  ;;  %v3997_v39 = vmul.f32 %v3717_v30, %v1487_v27 }
 0x679   : > { %v1488_v31 = vadd.f32 %v1486_v26, %v1473_v29 }
 0x67b   : > { %v4000_v32 = vmul.f32 %v3723_v37, %v1488_v31 }
 0x67d   : > { %v4004_v33 = vpack.c.bf16 %v4000_v32, %v3997_v39 }
 0x67f   : > { %2647 = vmatpush3.bf16.msra.mxu1 %v4004_v33 }
 0x680   : > { %2652 = vmatprep.subr.bf16.mxu1 %v3292_v0 }
 0x691   : > { %v1455_v21 = vpop.f32.mrf.mxu1 }
 0x692   : > { %v1462_v34 = vmul.f32 0.0078125, %v1455_v21 }
 0x693   : > { %v2644_v41 = vpop.f32.mrf.mxu1 }
 0x694   : > { %v1464_v44 = vmul.f32 %v1462_v34, %v3720_v36 }
 0x695   : > { %v1458_v56 = vpop.f32.mrf.mxu1 }
 0x696   : > { %v1478_v59 = vmul.f32 3.3399816, %v1464_v44  ;;  %v1463_v60 = vmul.f32 0.0078125, %v1458_v56 }
 0x697   : > { %v2645_v14 = vpop.f32.mrf.mxu1 }
 0x698   : > { %v1480_v16 = vadd.f32 %v1478_v59, %v1476_v57  ;;  %v1465_v17 = vmul.f32 %v1463_v60, %v3726_v38  ;;  %v1723_v60 = vmul.f32 0.8424817, %v3997_v39  ;;  %v2357_v14 = vld [vmem:[%s3679_s23 + $0x20] sm:$0xff] }
 0x69a   : > { %v1479_v19 = vmul.f32 3.3399816, %v1465_v17  ;;  %v1494_v22 = vadd.f32 %v1492_v43, %v1480_v16  ;;  %v1725_v43 = vadd.f32 %v1723_v60, %v3997_v39 }
 0x69c   : > { %v1481_v40 = vadd.f32 %v1479_v19, %v1477_v18  ;;  %v4017_v24 = vmul.f32 %v1494_v22, %v3720_v36  ;;  %v1724_v19 = vmul.f32 0.8424817, %v4000_v32 }
 0x69e   : > { %v1495_v23 = vadd.f32 %v1493_v20, %v1481_v40  ;;  %v2358_v20 = vld [vmem:[%s3679_s23 + $0x28] sm:$0xff] }
 0x6a0   : > { %v4020_v15 = vmul.f32 %v1495_v23, %v3726_v38  ;;  %v1742_v23 = vmul.f32 1.2980614, %v2357_v14 }
 0x6a2   : > { %v1501_v25 = vpack.c.bf16 %v4020_v15, %v4017_v24 }
 0x6a4   : > { %2649 = vmatmul.mubr.msk.bf16.vlgmr.msra.gmra.mxu1 %vm737_vm0, %v1501_v25 }
 0x6a5   : > { %2653 = vmatpush3.bf16.msra.mxu1 %v3747_v45  ;;  %2668 = vmatprep.mubr.msk.bf16.mxu1 %vm3293_vm1, %v3292_v0 }
 0x6a6   : > { %2654 = vmatprep.subr.bf16.mxu1 %v3292_v0 }
 0x6a9   : > { %2655 = vmatpush3.bf16.msra.mxu1 %v3752_v46 }
 0x6aa   : > { %2656 = vmatprep.subr.bf16.mxu1 %v3292_v0 }
 0x6ad   : > { %2657 = vmatpush3.bf16.msra.mxu1 %v3758_v47 }
 0x6ae   : > { %2658 = vmatprep.subr.bf16.mxu1 %v3292_v0 }
 0x6b1   : > { %2659 = vmatpush3.bf16.msra.mxu1 %v3762_v48 }
 0x6b2   : > { %2660 = vmatprep.subr.bf16.mxu1 %v3292_v0 }
 0x6b5   : > { %2661 = vmatpush3.bf16.msra.mxu1 %v3766_v49 }
 0x6b6   : > { %2662 = vmatprep.subr.bf16.mxu1 %v3292_v0 }
 0x6b9   : > { %2663 = vmatpush3.bf16.msra.mxu1 %v3770_v50 }
 0x6ba   : > { %2664 = vmatprep.subr.bf16.mxu1 %v3292_v0 }
 0x6bd   : > { %2665 = vmatpush3.bf16.msra.mxu1 %v3774_v51 }
 0x6be   : > { %2666 = vmatprep.subr.bf16.mxu1 %v3292_v0 }
 0x6c1   : > { %2667 = vmatpush3.bf16.msra.mxu1 %v3779_v52 }
 0x6c2   : > { %2692 = vmatprep.subr.bf16.mxu1 %v3292_v0 }
 0x764   : > { %v1539_v42 = vpop.f32.mrf.mxu1 }
 0x766   : > { %v2650_v26 = vpop.f32.mrf.mxu1 }
 0x768   : > { %v1542_v27 = vpop.f32.mrf.mxu1 }
 0x769   : > { %v1546_v29 = vpack.c.bf16 %v1542_v27, %v1539_v42  ;;  %v1726_v42 = vadd.f32 %v1724_v19, %v4000_v32  ;;  %v1743_v27 = vmul.f32 1.2980614, %v2358_v20 }
 0x76a   : > { %v2651_v31 = vpop.f32.mrf.mxu1 }
 0x76b   : > { %2669 = vmatmul.mubr.bf16.vlgmr.msra.gmra.mxu1 %v1546_v29 }
 0x76c   : > { %2693 = vmatpush3.bf16.msra.mxu1 %v3791_v58  ;;  %2708 = vmatprep.mubr.msk.bf16.mxu1 %vm3293_vm1, %v3292_v0 }
 0x76d   : > { %2694 = vmatprep.subr.bf16.mxu1 %v3292_v0 }
 0x770   : > { %2695 = vmatpush3.bf16.msra.mxu1 %v3794_v61 }
 0x771   : > { %2696 = vmatprep.subr.bf16.mxu1 %v3292_v0 }
 0x774   : > { %2697 = vmatpush3.bf16.msra.mxu1 %v3800_v62 }
 0x775   : > { %2698 = vmatprep.subr.bf16.mxu1 %v3292_v0 }
 0x778   : > { %2699 = vmatpush3.bf16.msra.mxu1 %v3804_v63 }
 0x779   : > { %2700 = vmatprep.subr.bf16.mxu1 %v3292_v0 }
 0x77c   : > { %2701 = vmatpush3.bf16.msra.mxu1 %v3808_v1 }
 0x77d   : > { %2702 = vmatprep.subr.bf16.mxu1 %v3292_v0 }
 0x780   : > { %2703 = vmatpush3.bf16.msra.mxu1 %v3812_v2 }
 0x781   : > { %2704 = vmatprep.subr.bf16.mxu1 %v3292_v0 }
 0x784   : > { %2705 = vmatpush3.bf16.msra.mxu1 %v3816_v3 }
 0x785   : > { %2706 = vmatprep.subr.bf16.mxu1 %v3292_v0 }
 0x788   : > { %2707 = vmatpush3.bf16.msra.mxu1 %v3820_v4 }
 0x789   : > { %2744 = vmatprep.subr.bf16.mxu1 %v3292_v0 }
 0x78b   : > { %2709 = vmatmul.mubr.bf16.vlgmr.msra.gmra.mxu1 %v4004_v33 }
 0x78c   : > { %2745 = vmatpush3.bf16.msra.mxu1 %v3783_v53  ;;  %2760 = vmatprep.mubr.msk.bf16.mxu1 %vm3293_vm1, %v3292_v0 }
 0x78d   : > { %2746 = vmatprep.subr.bf16.mxu1 %v3292_v0 }
 0x790   : > { %2747 = vmatpush3.bf16.msra.mxu1 %v3786_v54 }
 0x791   : > { %2748 = vmatprep.subr.bf16.mxu1 %v3292_v0 }
 0x794   : > { %2749 = vmatpush3.bf16.msra.mxu1 %v3832_v5 }
 0x795   : > { %2750 = vmatprep.subr.bf16.mxu1 %v3292_v0 }
 0x798   : > { %2751 = vmatpush3.bf16.msra.mxu1 %v3838_v6 }
 0x799   : > { %2752 = vmatprep.subr.bf16.mxu1 %v3292_v0 }
 0x79c   : > { %2753 = vmatpush3.bf16.msra.mxu1 %v3844_v7 }
 0x79d   : > { %2754 = vmatprep.subr.bf16.mxu1 %v3292_v0 }
 0x7a0   : > { %2755 = vmatpush3.bf16.msra.mxu1 %v3847_v8 }
 0x7a1   : > { %2756 = vmatprep.subr.bf16.mxu1 %v3292_v0 }
 0x7a4   : > { %2757 = vmatpush3.bf16.msra.mxu1 %v3853_v9 }
 0x7a5   : > { %2758 = vmatprep.subr.bf16.mxu1 %v3292_v0 }
 0x7a8   : > { %2759 = vmatpush3.bf16.msra.mxu1 %v3859_v10 }
 0x7a9   : > { %2784 = vmatprep.subr.bf16.mxu1 %v3292_v0 }
 0x82b   : > { %v1581_v53 = vpop.f32.mrf.mxu1 }
 0x82c   : > { %v1582_v54 = vadd.f32 %v3871_v11, %v1581_v53 }
 0x82d   : > { %v2670_v5 = vpop.f32.mrf.mxu1 }
 0x82e   : > { %2955 = vtanh.f32 %v1582_v54 }
 0x82f   : > { %v1584_v6 = vpop.f32.mrf.mxu1 }
 0x830   : > { %v1585_v7 = vadd.f32 %v3871_v11, %v1584_v6 }
 0x831   : > { %v2671_v33 = vpop.f32.mrf.mxu1 }
 0x832   : > { %2957 = vtanh.f32 %v1585_v7  ;;  %v1731_v7 = vmul.f32 0.8424817, %v4017_v24 }
 0x83b   : > { %v2956_v8 = vpop.eup %2955 }
 0x83f   : > { %v2958_v21 = vpop.eup %2957 }
 0x840   : > { %v1590_v34 = vpack.c.bf16 %v2958_v21, %v2956_v8  ;;  %v2359_v21 = vld [vmem:[%s3681_s8 + $0x20] sm:$0xff] }
 0x842   : > { %2689 = vmatmul.mubr.bf16.vlgmr.msra.gmra.mxu0 %v1590_v34 }
 0x843   : > { %2714 = vmatprep.mubr.msk.bf16.mxu0 %vm3293_vm1, %v3292_v0 }
 0x84b   : > { %v1668_v9 = vpop.f32.mrf.mxu1 }
 0x84c   : > { %2959 = vtanh.f32 %v1668_v9  ;;  %v1733_v9 = vadd.f32 %v1731_v7, %v4017_v24 }
 0x84d   : > { %v2710_v10 = vpop.f32.mrf.mxu1 }
 0x84f   : > { %v1671_v35 = vpop.f32.mrf.mxu1 }
 0x850   : > { %2961 = vtanh.f32 %v1671_v35 }
 0x851   : > { %v2711_v41 = vpop.f32.mrf.mxu1 }
 0x852   : > { %v1732_v41 = vmul.f32 0.8424817, %v4020_v15 }
 0x854   : > { %v1734_v60 = vadd.f32 %v1732_v41, %v4020_v15 }
 0x859   : > { %v2960_v44 = vpop.eup %2959 }
 0x85d   : > { %v2962_v55 = vpop.eup %2961 }
 0x85e   : > { %v1677_v56 = vpack.c.bf16 %v2962_v55, %v2960_v44  ;;  %v2360_v44 = vld [vmem:[%s3681_s8 + $0x28] sm:$0xff] }
 0x860   : > { %2713 = vmatpush3.bf16.xpose.msra.mxu0 %v1677_v56 }
 0x861   : > { %2718 = vmatprep.subr.bf16.mxu0 %v3292_v0 }
 0x867   : > { %2715 = vmatmul.mubr.bf16.vlgmr.msra.gmra.mxu0 %v1677_v56 }
 0x868   : > { %2720 = vmatprep.mubr.msk.bf16.mxu0 %vm3293_vm1, %v3292_v0 }
 0x902   : > { %v1625_v57 = vpop.f32.mrf.mxu0 }
 0x903   : > { %v1626_v59 = vadd.f32 %v3883_v28, %v1625_v57  ;;  %v1749_v57 = vmul.f32 1.2980614, %v2359_v21 }
 0x904   : > { %v2690_v12 = vpop.f32.mrf.mxu0 }
 0x905   : > { %v1632_v13 = vmul.f32 %v3717_v30, %v1626_v59 }
 0x906   : > { %v1628_v16 = vpop.f32.mrf.mxu0 }
 0x907   : > { %v1727_v17 = vmul.f32 1.6849633, %v1632_v13  ;;  %v1629_v18 = vadd.f32 %v3883_v28, %v1628_v16  ;;  %v1750_v13 = vmul.f32 1.2980614, %v2360_v44 }
 0x908   : > { %v2691_v22 = vpop.f32.mrf.mxu0 }
 0x909   : > { %v1729_v40 = vadd.f32 %v1727_v17, %v1725_v43  ;;  %v1633_v25 = vmul.f32 %v3723_v37, %v1629_v18 }
 0x90b   : > { %v1728_v26 = vmul.f32 1.6849633, %v1633_v25  ;;  %v1744_v29 = vadd.f32 %v1742_v23, %v1729_v40 }
 0x90d   : > { %v1730_v31 = vadd.f32 %v1728_v26, %v1726_v42  ;;  %v4098_v39 = vmul.f32 %v3717_v30, %v1744_v29 }
 0x90f   : > { %v1745_v53 = vadd.f32 %v1743_v27, %v1730_v31  ;;  %v1980_v25 = vmul.f32 0.014972513, %v4098_v39 }
 0x911   : > { %v4101_v54 = vmul.f32 %v3723_v37, %v1745_v53  ;;  %v1982_v27 = vadd.f32 %v1980_v25, %v4098_v39 }
 0x913   : > { %v4105_v5 = vpack.c.bf16 %v4101_v54, %v4098_v39  ;;  %v1981_v53 = vmul.f32 0.014972513, %v4101_v54 }
 0x915   : > { %2719 = vmatpush3.bf16.msra.mxu0 %v4105_v5 }
 0x916   : > { %2724 = vmatprep.subr.bf16.mxu0 %v3292_v0 }
 0x927   : > { %v1712_v32 = vpop.f32.mrf.mxu0 }
 0x928   : > { %v1719_v6 = vmul.f32 0.0078125, %v1712_v32 }
 0x929   : > { %v2716_v33 = vpop.f32.mrf.mxu0 }
 0x92a   : > { %v1721_v8 = vmul.f32 %v1719_v6, %v3720_v36  ;;  %v1983_v33 = vadd.f32 %v1981_v53, %v4101_v54 }
 0x92b   : > { %v1715_v34 = vpop.f32.mrf.mxu0 }
 0x92c   : > { %v1735_v10 = vmul.f32 1.6849633, %v1721_v8  ;;  %v1720_v35 = vmul.f32 0.0078125, %v1715_v34 }
 0x92d   : > { %v2717_v55 = vpop.f32.mrf.mxu0 }
 0x92e   : > { %v1737_v56 = vadd.f32 %v1735_v10, %v1733_v9  ;;  %v1722_v59 = vmul.f32 %v1720_v35, %v3726_v38 }
 0x930   : > { %v1736_v12 = vmul.f32 1.6849633, %v1722_v59  ;;  %v1751_v14 = vadd.f32 %v1749_v57, %v1737_v56 }
 0x932   : > { %v1738_v16 = vadd.f32 %v1736_v12, %v1734_v60  ;;  %v4118_v17 = vmul.f32 %v1751_v14, %v3720_v36 }
 0x934   : > { %v1752_v43 = vadd.f32 %v1750_v13, %v1738_v16 }
 0x936   : > { %v4121_v24 = vmul.f32 %v1752_v43, %v3726_v38 }
 0x938   : > { %v1758_v18 = vpack.c.bf16 %v4121_v24, %v4118_v17 }
 0x93a   : > { %2721 = vmatmul.mubr.msk.bf16.vlgmr.msra.gmra.mxu0 %vm737_vm0, %v1758_v18 }
 0x93b   : > { %2725 = vmatpush3.bf16.msra.mxu0 %v3747_v45  ;;  %2740 = vmatprep.mubr.msk.bf16.mxu0 %vm3293_vm1, %v3292_v0 }
 0x93c   : > { %2726 = vmatprep.subr.bf16.mxu0 %v3292_v0 }
 0x93f   : > { %2727 = vmatpush3.bf16.msra.mxu0 %v3752_v46 }
 0x940   : > { %2728 = vmatprep.subr.bf16.mxu0 %v3292_v0 }
 0x943   : > { %2729 = vmatpush3.bf16.msra.mxu0 %v3758_v47 }
 0x944   : > { %2730 = vmatprep.subr.bf16.mxu0 %v3292_v0 }
 0x947   : > { %2731 = vmatpush3.bf16.msra.mxu0 %v3762_v48 }
 0x948   : > { %2732 = vmatprep.subr.bf16.mxu0 %v3292_v0 }
 0x94b   : > { %2733 = vmatpush3.bf16.msra.mxu0 %v3766_v49 }
 0x94c   : > { %2734 = vmatprep.subr.bf16.mxu0 %v3292_v0 }
 0x94f   : > { %2735 = vmatpush3.bf16.msra.mxu0 %v3770_v50 }
 0x950   : > { %2736 = vmatprep.subr.bf16.mxu0 %v3292_v0 }
 0x953   : > { %2737 = vmatpush3.bf16.msra.mxu0 %v3774_v51 }
 0x954   : > { %2738 = vmatprep.subr.bf16.mxu0 %v3292_v0 }
 0x957   : > { %2739 = vmatpush3.bf16.msra.mxu0 %v3779_v52 }
 0x958   : > { %2764 = vmatprep.subr.bf16.mxu0 %v3292_v0 }
 0x9fa   : > { %v1796_v45 = vpop.f32.mrf.mxu0 }
 0x9fc   : > { %v2722_v46 = vpop.f32.mrf.mxu0 }
 0x9fe   : > { %v1799_v47 = vpop.f32.mrf.mxu0 }
 0x9ff   : > { %v1803_v48 = vpack.c.bf16 %v1799_v47, %v1796_v45 }
 0xa00   : > { %v2723_v15 = vpop.f32.mrf.mxu0 }
 0xa01   : > { %2741 = vmatmul.mubr.bf16.vlgmr.msra.gmra.mxu0 %v1803_v48 }
 0xa02   : > { %2765 = vmatpush3.bf16.msra.mxu0 %v3791_v58  ;;  %2780 = vmatprep.mubr.msk.bf16.mxu0 %vm3293_vm1, %v3292_v0 }
 0xa03   : > { %2766 = vmatprep.subr.bf16.mxu0 %v3292_v0 }
 0xa06   : > { %2767 = vmatpush3.bf16.msra.mxu0 %v3794_v61 }
 0xa07   : > { %2768 = vmatprep.subr.bf16.mxu0 %v3292_v0 }
 0xa0a   : > { %2769 = vmatpush3.bf16.msra.mxu0 %v3800_v62 }
 0xa0b   : > { %2770 = vmatprep.subr.bf16.mxu0 %v3292_v0 }
 0xa0e   : > { %2771 = vmatpush3.bf16.msra.mxu0 %v3804_v63 }
 0xa0f   : > { %2772 = vmatprep.subr.bf16.mxu0 %v3292_v0 }
 0xa12   : > { %2773 = vmatpush3.bf16.msra.mxu0 %v3808_v1 }
 0xa13   : > { %2774 = vmatprep.subr.bf16.mxu0 %v3292_v0 }
 0xa16   : > { %2775 = vmatpush3.bf16.msra.mxu0 %v3812_v2 }
 0xa17   : > { %2776 = vmatprep.subr.bf16.mxu0 %v3292_v0 }
 0xa1a   : > { %2777 = vmatpush3.bf16.msra.mxu0 %v3816_v3 }
 0xa1b   : > { %2778 = vmatprep.subr.bf16.mxu0 %v3292_v0 }
 0xa1e   : > { %2779 = vmatpush3.bf16.msra.mxu0 %v3820_v4 }
 0xa21   : > { %2781 = vmatmul.mubr.bf16.vlgmr.msra.gmra.mxu0 %v4105_v5 }
 0xac1   : > { %v1838_v49 = vpop.f32.mrf.mxu0 }
 0xac2   : > { %v1839_v50 = vadd.f32 %v3871_v11, %v1838_v49 }
 0xac3   : > { %v2742_v51 = vpop.f32.mrf.mxu0 }
 0xac4   : > { %2963 = vtanh.f32 %v1839_v50 }
 0xac5   : > { %v1841_v52 = vpop.f32.mrf.mxu0 }
 0xac6   : > { %v1842_v58 = vadd.f32 %v3871_v11, %v1841_v52 }
 0xac7   : > { %v2743_v61 = vpop.f32.mrf.mxu0 }
 0xac8   : > { %2965 = vtanh.f32 %v1842_v58 }
 0xad1   : > { %v2964_v62 = vpop.eup %2963 }
 0xad5   : > { %v2966_v63 = vpop.eup %2965 }
 0xad6   : > { %v1847_v1 = vpack.c.bf16 %v2966_v63, %v2964_v62 }
 0xad8   : > { %2761 = vmatmul.mubr.bf16.vlgmr.msra.gmra.mxu1 %v1847_v1 }
 0xad9   : > { %2786 = vmatprep.mubr.msk.bf16.mxu1 %vm3293_vm1, %v3292_v0 }
 0xae1   : > { %v1925_v2 = vpop.f32.mrf.mxu0 }
 0xae2   : > { %2967 = vtanh.f32 %v1925_v2 }
 0xae3   : > { %v2782_v3 = vpop.f32.mrf.mxu0 }
 0xae5   : > { %v1928_v4 = vpop.f32.mrf.mxu0 }
 0xae6   : > { %2969 = vtanh.f32 %v1928_v4 }
 0xae7   : > { %v2783_v19 = vpop.f32.mrf.mxu0 }
 0xaef   : > { %v2968_v20 = vpop.eup %2967 }
 0xaf3   : > { %v2970_v22 = vpop.eup %2969 }
 0xaf4   : > { %v1934_v40 = vpack.c.bf16 %v2970_v22, %v2968_v20 }
 0xaf6   : > { %2785 = vmatpush3.bf16.xpose.msra.mxu1 %v1934_v40 }
 0xafd   : > { %2787 = vmatmul.mubr.bf16.vlgmr.msra.gmra.mxu1 %v1934_v40 }
 0xb98   : > { %v1882_v11 = vpop.f32.mrf.mxu1 }
 0xb99   : > { %v1883_v23 = vadd.f32 %v3883_v28, %v1882_v11 }
 0xb9a   : > { %v2762_v42 = vpop.f32.mrf.mxu1 }
 0xb9b   : > { %v1889_v0 = vmul.f32 %v3717_v30, %v1883_v23 }
 0xb9c   : > { %v1885_v26 = vpop.f32.mrf.mxu1 }
 0xb9d   : > { %v1984_v29 = vmul.f32 0.029945025, %v1889_v0  ;;  %v1886_v31 = vadd.f32 %v3883_v28, %v1885_v26 }
 0xb9e   : > { %v2763_v5 = vpop.f32.mrf.mxu1 }
 0xb9f   : > { %v1986_v32 = vadd.f32 %v1984_v29, %v1982_v27  ;;  %v1890_v6 = vmul.f32 %v3723_v37, %v1886_v31 }
 0xba1   : > { %v1996_v7 = vmul.f32 %v3717_v30, %v1986_v32  ;;  %v1985_v8 = vmul.f32 0.029945025, %v1890_v6 }
 0xba3   : > { %2000 = vst [vmem:[%s722_s24] sm:$0xff] %v1996_v7  ;;  %v1987_v39 = vadd.f32 %v1985_v8, %v1983_v33 }
 0xba5   : > { %v1997_v30 = vmul.f32 %v3723_v37, %v1987_v39 }
 0xba7   : > { %2001 = vst [vmem:[%s722_s24 + $0x8] sm:$0xff] %v1997_v30 }
 0xba8   : > { %3166 = shalt.err (!%p3163_p12)
}
 0xba9   : > { %s3167_s23 = scalar_lea.hbm %s4182_s17, 256  ;;  %s3171_s14 = scalar_lea.hbm %s4333_s13, 512 }
 0xbaa   : > { %p3168_p10 = scmp.ne.s32.totalorder %s4182_s17, %s3167_s23  ;;  %p3172_p13 = scmp.lt.s32.totalorder %s4182_s17, %s4333_s13 }
 0xbab   : > { %p3173_p6 = scmp.lt.s32.totalorder %s3171_s14, %s3167_s23 }
 0xbac   : > { %p3169_p1 = pnand %p3168_p10, %p4334_p2 }
 0xbad   : > { %p3174_p11 = por %p3173_p6, %p3172_p13 }
 0xbae   : > { %p3170_p5 = pneg %p3169_p1 }
 0xbb0   : > { %p3175_p3 = pnand %p3174_p11, %p3170_p5 }
 0xbb2   : > { %3178 = shalt.err (!%p3175_p3)
}
 0xbb3   : > { %s3295_s29 = smov 128   ;;  %s3296_s24 = smov 8   ;;  %v1988_v54 = vmul.f32 0.014972513, %v4118_v17  ;;  %v1989_v44 = vmul.f32 0.014972513, %v4121_v24 }
 0xbb4   : > { %2831 = dma.vmem_to_hbm [thread:$0]  (%p4334_p2), %s4184_s15, 256, %s4182_s17, %s2009_s27, %s3295_s29, %s3295_s29, %s3296_s24   ;;  %v3297_v14 = vmov 1.0  }
 0xbb5   : > { %v1990_v10 = vadd.f32 %v1988_v54, %v4118_v17  ;;  %v1991_v60 = vadd.f32 %v1989_v44, %v4121_v24  ;;  %s729_s15 = scalar_lea.vmem [#allocation18], %s3658_s30  ;;  %s4335_s27 = sld [smem:[#allocation46_spill]] }
 0xbb6   : > { %s2043_s11 = sshll.u32 %s729_s15, 4  ;;  %s2014_s30 = scalar_lea.sflag [#allocation19], %s3655_s21  ;;  %s4230_s11 = int_to_ptr.vmem [resolvable:$true] %s2043_s11 }
 0xbb7   : > { %s3179_s10 = scalar_lea.vmem %s4230_s11, 256  ;;  %s3298_s25 = smov [#allocation18]  }
 0xbb8   : > { %p3180_p0 = scmp.ne.s32.totalorder %s4230_s11, %s3179_s10  ;;  %s3183_s19 = sshll.u32 %s3298_s25, 4  ;;  %s3184_s19 = int_to_ptr.vmem [resolvable:$false] %s3183_s19 }
 0xbb9   : > { %s3185_s6 = scalar_lea.vmem %s3184_s19, 512  ;;  %p3186_p8 = scmp.lt.s32.totalorder %s4230_s11, %s3184_s19 }
 0xbba   : > { %p3181_p7 = pnand %p3180_p0, %p4334_p2  ;;  %p3187_p4 = scmp.lt.s32.totalorder %s3185_s6, %s3179_s10 }
 0xbbb   : > { %s4228_s16 = scalar_lea.hbm %s4335_s27, %s2376_s18 }
 0xbbc   : > { %p3182_p9 = pneg %p3181_p7  ;;  %p3188_p12 = por %p3187_p4, %p3186_p8 }
 0xbbd   : > { %v1969_v37 = vpop.f32.mrf.mxu1 }
 0xbbe   : > { %v1976_v28 = vmul.f32 0.0078125, %v1969_v37  ;;  %p3189_p10 = pnand %p3188_p12, %p3182_p9 }
 0xbbf   : > { %v2788_v21 = vpop.f32.mrf.mxu1 }
 0xbc0   : > { %v1978_v34 = vmul.f32 %v1976_v28, %v3720_v36 }
 0xbc1   : > { %v1972_v9 = vpop.f32.mrf.mxu1 }
 0xbc2   : > { %v1992_v35 = vmul.f32 0.029945025, %v1978_v34  ;;  %v1977_v41 = vmul.f32 0.0078125, %v1972_v9 }
 0xbc3   : > { %v2789_v55 = vpop.f32.mrf.mxu1 }
 0xbc4   : > { %v1994_v56 = vadd.f32 %v1992_v35, %v1990_v10  ;;  %v1979_v57 = vmul.f32 %v1977_v41, %v3726_v38 }
 0xbc6   : > { %v1998_v59 = vmul.f32 %v1994_v56, %v3720_v36  ;;  %v1993_v12 = vmul.f32 0.029945025, %v1979_v57 }
 0xbc8   : > { %vm2002_vm5 = vcmp.lt.f32.partialorder %v1998_v59, 0.5  ;;  %v1995_v13 = vadd.f32 %v1993_v12, %v1991_v60 }
 0xbc9   : > { %v2004_v16 = vsel %vm2002_vm5, 0.0, %v3297_v14 }
 0xbca   : > { %2006 = vst.msk [vmem:[%s729_s15] sm:$0xff] %vm737_vm0, %v2004_v16  ;;  %v1999_v43 = vmul.f32 %v1995_v13, %v3726_v38 }
 0xbcc   : > { %vm2003_vm6 = vcmp.lt.f32.partialorder %v1999_v43, 0.5 }
 0xbcd   : > { %v2005_v36 = vsel %vm2003_vm6, 0.0, %v3297_v14 }
 0xbce   : > { %2007 = vst.msk [vmem:[%s729_s15 + $0x8] sm:$0xff] %vm737_vm0, %v2005_v36 }
 0xbcf   : > { %3192 = shalt.err (!%p3189_p10)
}
 0xbd0   : > { %s3193_s18 = scalar_lea.hbm %s4228_s16, 256  ;;  %s3197_s28 = scalar_lea.hbm %s4335_s27, 512 }
 0xbd1   : > { %p3194_p1 = scmp.ne.s32.totalorder %s4228_s16, %s3193_s18  ;;  %p3198_p6 = scmp.lt.s32.totalorder %s4228_s16, %s4335_s27 }
 0xbd2   : > { %p3199_p11 = scmp.lt.s32.totalorder %s3197_s28, %s3193_s18 }
 0xbd3   : > { %p3195_p5 = pnand %p3194_p1, %p4334_p2 }
 0xbd4   : > { %p3200_p3 = por %p3199_p11, %p3198_p6 }
 0xbd5   : > { %p3196_p13 = pneg %p3195_p5 }
 0xbd7   : > { %p3201_p0 = pnand %p3200_p3, %p3196_p13 }
 0xbd9   : > { %3204 = shalt.err (!%p3201_p0)
}
 0xbda   : > { %2832 = dma.vmem_to_hbm [thread:$0]  (%p4334_p2), %s4230_s11, 256, %s4228_s16, %s2014_s30, %s3295_s29, %s3295_s29, %s3296_s24  }
 0xbdb PF: > { %s4336_s12 = sld [smem:[#allocation34_spill]] }
 0xbdc   : > { %s4337_s20 = sld [smem:[#allocation40_spill]] }
 0xbdd   : > { %s4338_s15 = sld [smem:[#allocation36_spill]] }
 0xbe1   : > { %s2058_s26 = sand.u32 1, %s4336_s12  }
 0xbe2   : > { %p4339_p7 = scmp.ne.s32.totalorder %s4337_s20, 0  ;;  %s2059_s17 = scalar_lea.sflag [#allocation4], %s2058_s26 }
 0xbe3   : > { %p4340_p9 = scmp.ge.s32.totalorder %s4338_s15, 2 }
 0xbe5   : > { %p2846_p8 = pnand %p4340_p9, %p4339_p7 }
 0xbe7   : > { %p2847_p4 = pneg %p2846_p8 }
 0xbe9   : > { %3246 = dma.done.wait (%p2847_p4), %s2059_s17, 256  }
 0xbea   : > { %3248 = vsyncadd (%p2847_p4), %s2059_s17, 4294967040  ;;  %s2068_s10 = scalar_lea.sflag [#allocation19], %s2058_s26 }
 0xbeb   : > { %3250 = dma.done.wait (%p2847_p4), %s2068_s10, 256  }
 0xbec   : > { %3252 = vsyncadd (%p2847_p4), %s2068_s10, 4294967040  ;;  %s4341_s24 = sld [smem:[#allocation37_spill]]  ;;  %s4344_s21 = smov %s3259_s22 }
 0xbed   : > { %s4342_s1 = sld [smem:[#allocation35_spill]] }
 0xbee   : > { %s4343_s23 = sld [smem:[#allocation38_spill]] }
 0xbf2   : > { %p39_p2 = scmp.ge.s32.totalorder %s4341_s24, 4  }
 0xbf3   : > { %s4345_s22 = smov %s4342_s1 }
 0xbf4   :  { %41 = sbr.rel (!%p39_p2) target bundleno = 21 (0x15), region = 213 }
 0xbf9   :  { %2073 = vsyncpa [#allocation3], 1 }
 0xbfa   :  { %2075 = vsyncpa [#allocation3 + $0x1], 1 }
 0xbfb   :  { %2076 = vsyncpa [#allocation6], 1 }
 0xbfc   :  { %2078 = vsyncpa [#allocation6 + $0x1], 1 }
 0xbfd   :  { %2079 = vsyncpa [#allocation9], 1 }
 0xbfe   :  { %2081 = vsyncpa [#allocation9 + $0x1], 1 }
 0xbff   :  { %2082 = vsyncpa [#allocation12], 1 }
 0xc00   :  { %2084 = vsyncpa [#allocation12 + $0x1], 1 }
 0xc01   :  { %2085 = vsyncpa [#allocation15], 1 }
 0xc02   :  { %2086 = vsyncpa [#allocation4], 1 }
 0xc03   :  { %2088 = vsyncpa [#allocation4 + $0x1], 1 }
 0xc04   :  { %2089 = vsyncpa [#allocation19], 1 }
 0xc05   :  { %2091 = vsyncpa [#allocation19 + $0x1], 1 }

</bundles_post_ra>
